<compile_context>
chip_gen: v7x
topology: tpu7x:2x2x1
jax: 0.10.0
libtpu: 0.0.40
codegen_flags: <defaults>
</compile_context>

<pallas_src>
import functools

import jax
import jax.numpy as jnp
import numpy as np
from jax.experimental import pallas as pl
from jax.experimental.pallas import tpu as pltpu

NEG_SLOPE = 0.01  # PyTorch LeakyReLU default


def _make_encoder_kernel(channels):
    """Kernel factory.

    channels = (c_in0, c1, ..., num_channel)  -- static per-layer channel counts.

    In-kernel layout (channel-major, batch on the 128-lane axis):
      x_ref     : (1, tile_b)            voxel values
      y_ref     : (num_labels, tile_b)   labels, channel-major
      wh_ref    : (L, c_max, c_max)      zero-padded hidden weights (C_out, C_in)
      bh_ref    : (L, c_max, 1)          zero-padded hidden biases
      whead_ref : (2*latent_dim, num_channel)  fused [mean; logvar] weights
      bhead_ref : (2*latent_dim, 1)            fused [mean; logvar] biases
      out_ref   : (2*latent_dim, tile_b)       fused [mean; logvar] output (lane-dense)
    """
    n_hidden = len(channels) - 1
    c_in0, c_out0 = channels[0], channels[1]

    def kernel(x_ref, y_ref, wh_ref, bh_ref, whead_ref, bhead_ref, out_ref):
        x = x_ref[...].astype(jnp.float32)    # (1, tile_b)
        yc = y_ref[...].astype(jnp.float32)   # (num_labels, tile_b)

        # Layer 0: X contribution is an outer product -> cheap VPU broadcast-mul;
        # y contribution is a small-K MXU matmul. Slice weights to live channels.
        w0 = wh_ref[0]                         # (c_max, c_max)
        h = (
            w0[:c_out0, 0:1] * x
            + jnp.dot(w0[:c_out0, 1:c_in0], yc, preferred_element_type=jnp.float32)
            + bh_ref[0][:c_out0]
        )
        h = jnp.where(h > 0, h, NEG_SLOPE * h)  # LeakyReLU, full-lane VPU op

        # Remaining hidden layers (statically unrolled; shapes grow 8->16->32 rows).
        for li in range(1, n_hidden):
            c_in, c_out = channels[li], channels[li + 1]
            w = wh_ref[li][:c_out, :c_in]
            b = bh_ref[li][:c_out]
            h = jnp.dot(w, h, preferred_element_type=jnp.float32) + b
            h = jnp.where(h > 0, h, NEG_SLOPE * h)

        # Fused [mean; logvar] head; lane-dense (2L, tile_b) store.
        out = jnp.dot(whead_ref[...], h, preferred_element_type=jnp.float32) + bhead_ref[...]
        out_ref[...] = out.astype(out_ref.dtype)

    return kernel


def pack_params(params, *, num_labels):
    """Pack per-layer PyTorch-style params into the kernel's fused/padded buffers."""
    layer_ws, layer_bs = params["layer_ws"], params["layer_bs"]  # (C_out, C_in), (C_out,)
    num_layers = len(layer_ws)
    latent_dim = params["w_mean"].shape[0]
    c_in0 = 1 + num_labels
    channels = (c_in0,) + tuple(int(w.shape[0]) for w in layer_ws)
    c_max = max(channels)

    wh = jnp.zeros((num_layers, c_max, c_max), jnp.float32)
    bh = jnp.zeros((num_layers, c_max, 1), jnp.float32)
    for li, (w, b) in enumerate(zip(layer_ws, layer_bs)):
        co, ci = w.shape
        wh = wh.at[li, :co, :ci].set(w)
        bh = bh.at[li, :co, 0].set(b)

    whead = jnp.concatenate([params["w_mean"], params["w_logvar"]], axis=0)      # (2L, C)
    bhead = jnp.concatenate([params["b_mean"], params["b_logvar"]]).reshape(-1, 1)

    return {
        "w_hidden": wh,
        "b_hidden": bh,
        "w_head": whead,
        "b_head": bhead,
        "channels": channels,
        "latent_dim": int(latent_dim),
    }


@functools.partial(
    jax.jit, static_argnames=("channels", "latent_dim", "tile_b", "io_dtype")
)
def encoder_forward(
    X, y, w_hidden, b_hidden, w_head, b_head,
    *, channels, latent_dim, tile_b=2048, io_dtype=jnp.float32,
):
    """X: (B,) f32, y: (B, num_labels) f32.  Returns (z_mean, z_logvar), each (B, latent_dim).

    Entire wrapper is jitted so the reshape/pad and the final transpose fuse with the
    pallas_call into a single dispatch.  io_dtype controls only the HBM/DMA dtype of
    the kernel's activations; all in-kernel math is f32 (safe on v5e's f32-only VPU).
    """
    B = X.shape[0]
    num_labels = channels[0] - 1

    # Channel-major operands; no materialized (1+num_labels, B) concat buffer.
    x_cm = X.reshape(1, B).astype(io_dtype)                       # (1, B)
    y_cm = y.reshape(B, num_labels).T.astype(io_dtype)            # (num_labels, B), fused transpose

    num_tiles = pl.cdiv(B, tile_b)
    b_pad = num_tiles * tile_b
    if b_pad != B:  # zero-pad batch columns; zeros propagate harmlessly and are sliced off
        x_cm = jnp.pad(x_cm, ((0, 0), (0, b_pad - B)))
        y_cm = jnp.pad(y_cm, ((0, 0), (0, b_pad - B)))

    kernel = _make_encoder_kernel(channels)

    in_specs = [
        pl.BlockSpec((1, tile_b), lambda i: (0, i)),            # X tile: batch on lanes
        pl.BlockSpec((num_labels, tile_b), lambda i: (0, i)),   # y tile: batch on lanes
        pl.BlockSpec(w_hidden.shape, lambda i: (0, 0, 0)),      # packed hidden weights (resident)
        pl.BlockSpec(b_hidden.shape, lambda i: (0, 0, 0)),      # packed hidden biases
        pl.BlockSpec(w_head.shape, lambda i: (0, 0)),           # fused head weights
        pl.BlockSpec(b_head.shape, lambda i: (0, 0)),           # fused head biases
    ]
    out_specs = pl.BlockSpec((2 * latent_dim, tile_b), lambda i: (0, i))
    out_shape = jax.ShapeDtypeStruct((2 * latent_dim, b_pad), io_dtype)

    # Advisory cost estimate (kernel is HBM/overhead bound; helps XLA's scheduler).
    hidden_flops = sum(2 * channels[i] * channels[i + 1] for i in range(len(channels) - 1))
    head_flops = 2 * channels[-1] * (2 * latent_dim)
    io_itemsize = jnp.dtype(io_dtype).itemsize
    io_bytes = b_pad * (channels[0] + 2 * latent_dim) * io_itemsize
    w_bytes = 4 * (w_hidden.size + b_hidden.size + w_head.size + b_head.size)
    cost = pl.CostEstimate(
        flops=int(b_pad * (hidden_flops + head_flops)),
        transcendentals=0,
        bytes_accessed=int(io_bytes + w_bytes),
    )

    out = pl.pallas_call(
        kernel,
        out_shape=out_shape,
        grid_spec=pltpu.PrefetchScalarGridSpec(
            num_scalar_prefetch=0,
            grid=(num_tiles,),
            in_specs=in_specs,
            out_specs=out_specs,
        ),
        compiler_params=pltpu.CompilerParams(dimension_semantics=("parallel",)),
        cost_estimate=cost,
    )(x_cm, y_cm, w_hidden, b_hidden, w_head, b_head)

    # One transpose back to the module's (B, latent_dim) convention, fused under jit.
    # TODO(synk): if the downstream reparameterization/decoder accepts channel-major
    # (latent_dim, B), return `out[:, :B]` slices directly and drop this transpose.
    zb = out[:, :B].T
    return zb[:, :latent_dim], zb[:, latent_dim:]


def init_params(key, *, num_labels, num_layers, num_channel, latent_dim):
    """Deterministic synthetic params in PyTorch orientation: weights are (C_out, C_in)."""
    keys = jax.random.split(key, 2 * num_layers + 4)
    layer_ws, layer_bs = [], []
    in_channel = 1 + num_labels
    ki = 0
    for i in reversed(range(num_layers)):
        out_channel = int(num_channel / 2 ** i)
        # PyTorch Conv1d weight is (out, in, 1); we keep (out, in).
        w = jax.random.normal(keys[ki], (out_channel, in_channel), jnp.float32) * 0.2
        b = jax.random.normal(keys[ki + 1], (out_channel,), jnp.float32) * 0.1
        layer_ws.append(w)
        layer_bs.append(b)
        in_channel = out_channel
        ki += 2
    w_mean = jax.random.normal(keys[ki], (latent_dim, num_channel), jnp.float32) * 0.2
    b_mean = jax.random.normal(keys[ki + 1], (latent_dim,), jnp.float32) * 0.1
    w_logvar = jax.random.normal(keys[ki + 2], (latent_dim, num_channel), jnp.float32) * 0.2
    b_logvar = jax.random.normal(keys[ki + 3], (latent_dim,), jnp.float32) * 0.1
    return {
        "layer_ws": layer_ws,
        "layer_bs": layer_bs,
        "w_mean": w_mean,
        "b_mean": b_mean,
        "w_logvar": w_logvar,
        "b_logvar": b_logvar,
    }


def reference_forward(X, y, params, *, num_labels):
    """Pure-JAX reference matching the PyTorch forward."""
    B = X.shape[0]
    h = jnp.concatenate([X.reshape(B, 1), y.reshape(B, num_labels)], axis=1)
    for w, b in zip(params["layer_ws"], params["layer_bs"]):
        h = h @ w.T + b
        h = jnp.where(h > 0, h, NEG_SLOPE * h)
    z_mean = h @ params["w_mean"].T + params["b_mean"]
    z_logvar = h @ params["w_logvar"].T + params["b_logvar"]
    return z_mean, z_logvar


if __name__ == "__main__":
    # Settings consistent with the module:
    NUM_LABELS = 3     # in_channel = 1 + 3 = 4
    NUM_LAYERS = 3     # channels: 4 -> 8 -> 16 -> 32
    NUM_CHANNEL = 32
    LATENT_DIM = 8
    B = 4000           # flattened voxel batch; NOT a multiple of tile_b (exercises padding)
    TILE_B = 2048      # grid = 2 (even -> both v7x TCs busy); ~0.2 MiB/step << VMEM on all gens

    key = jax.random.PRNGKey(0)
    kx, ky, kp = jax.random.split(key, 3)
    X = jax.random.normal(kx, (B,), jnp.float32)
    y = jax.random.normal(ky, (B, NUM_LABELS), jnp.float32)
    params = init_params(
        kp,
        num_labels=NUM_LABELS,
        num_layers=NUM_LAYERS,
        num_channel=NUM_CHANNEL,
        latent_dim=LATENT_DIM,
    )
    packed = pack_params(params, num_labels=NUM_LABELS)

    z_mean, z_logvar = encoder_forward(
        X, y,
        packed["w_hidden"], packed["b_hidden"], packed["w_head"], packed["b_head"],
        channels=packed["channels"], latent_dim=packed["latent_dim"],
        tile_b=TILE_B, io_dtype=jnp.float32,
    )
    jax.block_until_ready((z_mean, z_logvar))

    ref_mean, ref_logvar = reference_forward(X, y, params, num_labels=NUM_LABELS)
    np.testing.assert_allclose(np.asarray(z_mean), np.asarray(ref_mean), rtol=1e-5, atol=1e-5)
    np.testing.assert_allclose(np.asarray(z_logvar), np.asarray(ref_logvar), rtol=1e-5, atol=1e-5)

    print("KERNEL_OK")
</pallas_src>

<mosaic_0001>
module attributes {stable_mosaic.version = 11 : i64} {
  func.func @kernel(%arg0: i32, %arg1: memref<1x2048xf32, #tpu.memory_space<vmem>>, %arg2: memref<3x2048xf32, #tpu.memory_space<vmem>>, %arg3: memref<3x32x32xf32, #tpu.memory_space<vmem>>, %arg4: memref<3x32x1xf32, #tpu.memory_space<vmem>>, %arg5: memref<16x32xf32, #tpu.memory_space<vmem>>, %arg6: memref<16x1xf32, #tpu.memory_space<vmem>>, %arg7: memref<16x2048xf32, #tpu.memory_space<vmem>>) attributes {dimension_semantics = [#tpu.dimension_semantics<parallel>], iteration_bounds = array<i64: 2>, scalar_prefetch = 0 : i64, scratch_operands = 0 : i64, tpu.core_type = #tpu.core_type<tc>, window_params = [{transform_indices = @transform_0, window_bounds = array<i64: 1, 2048>}, {transform_indices = @transform_1, window_bounds = array<i64: 3, 2048>}, {pipeline_mode = #tpu.pipeline_mode<synchronous>, transform_indices = @transform_2, window_bounds = array<i64: 3, 32, 32>}, {pipeline_mode = #tpu.pipeline_mode<synchronous>, transform_indices = @transform_3, window_bounds = array<i64: 3, 32, 1>}, {pipeline_mode = #tpu.pipeline_mode<synchronous>, transform_indices = @transform_4, window_bounds = array<i64: 16, 32>}, {pipeline_mode = #tpu.pipeline_mode<synchronous>, transform_indices = @transform_5, window_bounds = array<i64: 16, 1>}, {transform_indices = @transform_6, window_bounds = array<i64: 16, 2048>}]} {
    %c0 = arith.constant 0 : index
    %c0_0 = arith.constant 0 : index
    %0 = vector.load %arg1[%c0, %c0_0] : memref<1x2048xf32, #tpu.memory_space<vmem>>, vector<1x2048xf32>
    %c0_1 = arith.constant 0 : index
    %c0_2 = arith.constant 0 : index
    %1 = vector.load %arg2[%c0_1, %c0_2] : memref<3x2048xf32, #tpu.memory_space<vmem>>, vector<3x2048xf32>
    %c0_3 = arith.constant 0 : index
    %c0_4 = arith.constant 0 : index
    %c0_5 = arith.constant 0 : index
    %2 = vector.load %arg3[%c0_3, %c0_4, %c0_5] : memref<3x32x32xf32, #tpu.memory_space<vmem>>, vector<1x32x32xf32>
    %3 = vector.shape_cast %2 : vector<1x32x32xf32> to vector<32x32xf32>
    %4 = vector.extract_strided_slice %3 {offsets = [0, 0], sizes = [8, 1], strides = [1, 1]} : vector<32x32xf32> to vector<8x1xf32>
    %5 = vector.broadcast %4 : vector<8x1xf32> to vector<8x2048xf32>
    %6 = vector.broadcast %0 : vector<1x2048xf32> to vector<8x2048xf32>
    %7 = arith.mulf %5, %6 : vector<8x2048xf32>
    %8 = vector.extract_strided_slice %3 {offsets = [0, 1], sizes = [8, 3], strides = [1, 1]} : vector<32x32xf32> to vector<8x3xf32>
    %cst = arith.constant dense<0.000000e+00> : vector<8x2048xf32>
    %9 = tpu.matmul %8, %1, %cst {dimension_numbers = #tpu.dot_dimension_numbers<[1], [0], [0], [1], [0, 0, 1, 1], [], []>} : vector<8x3xf32>, vector<3x2048xf32>, vector<8x2048xf32> -> vector<8x2048xf32>
    %10 = arith.addf %7, %9 : vector<8x2048xf32>
    %c0_6 = arith.constant 0 : index
    %c0_7 = arith.constant 0 : index
    %c0_8 = arith.constant 0 : index
    %11 = vector.load %arg4[%c0_6, %c0_7, %c0_8] : memref<3x32x1xf32, #tpu.memory_space<vmem>>, vector<1x32x1xf32>
    %12 = vector.shape_cast %11 : vector<1x32x1xf32> to vector<32x1xf32>
    %13 = vector.extract_strided_slice %12 {offsets = [0, 0], sizes = [8, 1], strides = [1, 1]} : vector<32x1xf32> to vector<8x1xf32>
    %14 = vector.broadcast %13 : vector<8x1xf32> to vector<8x2048xf32>
    %15 = arith.addf %10, %14 : vector<8x2048xf32>
    %cst_9 = arith.constant 0.000000e+00 : f32
    %16 = vector.broadcast %cst_9 : f32 to vector<8x2048xf32>
    %17 = arith.cmpf ogt, %15, %16 : vector<8x2048xf32>
    %cst_10 = arith.constant 0.00999999977 : f32
    %18 = vector.broadcast %cst_10 : f32 to vector<8x2048xf32>
    %19 = arith.mulf %18, %15 : vector<8x2048xf32>
    %20 = arith.select %17, %15, %19 : vector<8x2048xi1>, vector<8x2048xf32>
    %c1 = arith.constant 1 : index
    %c0_11 = arith.constant 0 : index
    %c0_12 = arith.constant 0 : index
    %21 = vector.load %arg3[%c1, %c0_11, %c0_12] : memref<3x32x32xf32, #tpu.memory_space<vmem>>, vector<1x32x32xf32>
    %22 = vector.shape_cast %21 : vector<1x32x32xf32> to vector<32x32xf32>
    %23 = vector.extract_strided_slice %22 {offsets = [0, 0], sizes = [16, 8], strides = [1, 1]} : vector<32x32xf32> to vector<16x8xf32>
    %c1_13 = arith.constant 1 : index
    %c0_14 = arith.constant 0 : index
    %c0_15 = arith.constant 0 : index
    %24 = vector.load %arg4[%c1_13, %c0_14, %c0_15] : memref<3x32x1xf32, #tpu.memory_space<vmem>>, vector<1x32x1xf32>
    %25 = vector.shape_cast %24 : vector<1x32x1xf32> to vector<32x1xf32>
    %26 = vector.extract_strided_slice %25 {offsets = [0, 0], sizes = [16, 1], strides = [1, 1]} : vector<32x1xf32> to vector<16x1xf32>
    %cst_16 = arith.constant dense<0.000000e+00> : vector<16x2048xf32>
    %27 = tpu.matmul %23, %20, %cst_16 {dimension_numbers = #tpu.dot_dimension_numbers<[1], [0], [0], [1], [0, 0, 1, 1], [], []>} : vector<16x8xf32>, vector<8x2048xf32>, vector<16x2048xf32> -> vector<16x2048xf32>
    %28 = vector.broadcast %26 : vector<16x1xf32> to vector<16x2048xf32>
    %29 = arith.addf %27, %28 : vector<16x2048xf32>
    %cst_17 = arith.constant 0.000000e+00 : f32
    %30 = vector.broadcast %cst_17 : f32 to vector<16x2048xf32>
    %31 = arith.cmpf ogt, %29, %30 : vector<16x2048xf32>
    %cst_18 = arith.constant 0.00999999977 : f32
    %32 = vector.broadcast %cst_18 : f32 to vector<16x2048xf32>
    %33 = arith.mulf %32, %29 : vector<16x2048xf32>
    %34 = arith.select %31, %29, %33 : vector<16x2048xi1>, vector<16x2048xf32>
    %c2 = arith.constant 2 : index
    %c0_19 = arith.constant 0 : index
    %c0_20 = arith.constant 0 : index
    %35 = vector.load %arg3[%c2, %c0_19, %c0_20] : memref<3x32x32xf32, #tpu.memory_space<vmem>>, vector<1x32x32xf32>
    %36 = vector.shape_cast %35 : vector<1x32x32xf32> to vector<32x32xf32>
    %37 = vector.extract_strided_slice %36 {offsets = [0, 0], sizes = [32, 16], strides = [1, 1]} : vector<32x32xf32> to vector<32x16xf32>
    %c2_21 = arith.constant 2 : index
    %c0_22 = arith.constant 0 : index
    %c0_23 = arith.constant 0 : index
    %38 = vector.load %arg4[%c2_21, %c0_22, %c0_23] : memref<3x32x1xf32, #tpu.memory_space<vmem>>, vector<1x32x1xf32>
    %39 = vector.shape_cast %38 : vector<1x32x1xf32> to vector<32x1xf32>
    %cst_24 = arith.constant dense<0.000000e+00> : vector<32x2048xf32>
    %40 = tpu.matmul %37, %34, %cst_24 {dimension_numbers = #tpu.dot_dimension_numbers<[1], [0], [0], [1], [0, 0, 1, 1], [], []>} : vector<32x16xf32>, vector<16x2048xf32>, vector<32x2048xf32> -> vector<32x2048xf32>
    %41 = vector.broadcast %39 : vector<32x1xf32> to vector<32x2048xf32>
    %42 = arith.addf %40, %41 : vector<32x2048xf32>
    %cst_25 = arith.constant 0.000000e+00 : f32
    %43 = vector.broadcast %cst_25 : f32 to vector<32x2048xf32>
    %44 = arith.cmpf ogt, %42, %43 : vector<32x2048xf32>
    %cst_26 = arith.constant 0.00999999977 : f32
    %45 = vector.broadcast %cst_26 : f32 to vector<32x2048xf32>
    %46 = arith.mulf %45, %42 : vector<32x2048xf32>
    %47 = arith.select %44, %42, %46 : vector<32x2048xi1>, vector<32x2048xf32>
    %c0_27 = arith.constant 0 : index
    %c0_28 = arith.constant 0 : index
    %48 = vector.load %arg5[%c0_27, %c0_28] : memref<16x32xf32, #tpu.memory_space<vmem>>, vector<16x32xf32>
    %cst_29 = arith.constant dense<0.000000e+00> : vector<16x2048xf32>
    %49 = tpu.matmul %48, %47, %cst_29 {dimension_numbers = #tpu.dot_dimension_numbers<[1], [0], [0], [1], [0, 0, 1, 1], [], []>} : vector<16x32xf32>, vector<32x2048xf32>, vector<16x2048xf32> -> vector<16x2048xf32>
    %c0_30 = arith.constant 0 : index
    %c0_31 = arith.constant 0 : index
    %50 = vector.load %arg6[%c0_30, %c0_31] : memref<16x1xf32, #tpu.memory_space<vmem>>, vector<16x1xf32>
    %51 = vector.broadcast %50 : vector<16x1xf32> to vector<16x2048xf32>
    %52 = arith.addf %49, %51 : vector<16x2048xf32>
    %c0_32 = arith.constant 0 : index
    %c0_33 = arith.constant 0 : index
    %53 = vector.load %arg7[%c0_32, %c0_33] : memref<16x2048xf32, #tpu.memory_space<vmem>>, vector<16x2048xf32>
    tpu.vector_store %arg7[%c0_32, %c0_33], %52 {strides = array<i32>} : memref<16x2048xf32, #tpu.memory_space<vmem>>, vector<16x2048xf32>,
    return
  }
  func.func @transform_0(%arg0: i32) -> (i32, i32) {
    %c0_i32 = arith.constant 0 : i32
    %c0_i32_0 = arith.constant 0 : i32
    return %c0_i32, %arg0 : i32, i32
  }
  func.func @transform_1(%arg0: i32) -> (i32, i32) {
    %c0_i32 = arith.constant 0 : i32
    %c0_i32_0 = arith.constant 0 : i32
    return %c0_i32, %arg0 : i32, i32
  }
  func.func @transform_2(%arg0: i32) -> (i32, i32, i32) {
    %c0_i32 = arith.constant 0 : i32
    %c0_i32_0 = arith.constant 0 : i32
    %c0_i32_1 = arith.constant 0 : i32
    %c0_i32_2 = arith.constant 0 : i32
    return %c0_i32, %c0_i32_0, %c0_i32_1 : i32, i32, i32
  }
  func.func @transform_3(%arg0: i32) -> (i32, i32, i32) {
    %c0_i32 = arith.constant 0 : i32
    %c0_i32_0 = arith.constant 0 : i32
    %c0_i32_1 = arith.constant 0 : i32
    %c0_i32_2 = arith.constant 0 : i32
    return %c0_i32, %c0_i32_0, %c0_i32_1 : i32, i32, i32
  }
  func.func @transform_4(%arg0: i32) -> (i32, i32) {
    %c0_i32 = arith.constant 0 : i32
    %c0_i32_0 = arith.constant 0 : i32
    %c0_i32_1 = arith.constant 0 : i32
    return %c0_i32, %c0_i32_0 : i32, i32
  }
  func.func @transform_5(%arg0: i32) -> (i32, i32) {
    %c0_i32 = arith.constant 0 : i32
    %c0_i32_0 = arith.constant 0 : i32
    %c0_i32_1 = arith.constant 0 : i32
    return %c0_i32, %c0_i32_0 : i32, i32
  }
  func.func @transform_6(%arg0: i32) -> (i32, i32) {
    %c0_i32 = arith.constant 0 : i32
    %c0_i32_0 = arith.constant 0 : i32
    return %c0_i32, %arg0 : i32, i32
  }
}

</mosaic_0001>

<bundles_post_ra>
// kernel: encoder_forward.1
= control target key start
LH: loop header
LB: loop body
LE: loop exit
PB: predicated region body
PF: predicated region fallthrough
CT: control target
= control target key end

     0   :  { %s3899_s21 = smov 0   ;;  %s3901_s22 = smov 0   ;;  %s4810_s0 = inlined_call_operand.vmem [shape: f32[1,4096], index: 0, kind: input, shape index: {}]   ;;  %s4811_s1 = inlined_call_operand.vmem [shape: f32[3,4096], index: 1, kind: input, shape index: {}]   ;;  %s4812_s2 = inlined_call_operand.vmem [shape: f32[3,32,32], index: 2, kind: input, shape index: {}]   ;;  %s4813_s3 = inlined_call_operand.vmem [shape: f32[3,32,1], index: 3, kind: input, shape index: {}]   ;;  %s4814_s4 = inlined_call_operand.vmem [shape: f32[16,32], index: 4, kind: input, shape index: {}]   ;;  %s4815_s5 = inlined_call_operand.vmem [shape: f32[16,1], index: 5, kind: input, shape index: {}]   ;;  %s4816_s6 = inlined_call_operand.vmem [shape: f32[16,4096], index: 6, kind: output, shape index: {}]  }
   0x1   :  { %s3903_s23 = smov 0  }
   0x2 LB: > { %s3912_s24 = sadd.s32 4294967295, %s3859_s23   ;;  %s3914_s25 = sadd.s32 1, %s3859_s23   ;;  %s3859_s23 = sphi %s3903_s23, %s4820_s23   ;;  %s3855_s22 = sphi %s3901_s22, %s4819_s22   ;;  %s3851_s21 = sphi %s3899_s21, %s4818_s21  }
   0x3   : > { %s156_s26 = ssub.s32 %s3859_s23, %s3914_s25  ;;  %s159_s27 = sadd.s32 1, %s3855_s22 }
   0x4   : > { %p157_p0 = scmp.eq.s32.totalorder %s156_s26, 0  ;;  %p169_p1 = scmp.ne.s32.totalorder %s3855_s22, %s3851_s21 }
   0x5   : > { %p170_p2 = scmp.eq.s32.totalorder %s3912_s24, 1  ;;  %p3593_p3 = scmp.ge.s32.totalorder %s3859_s23, 1 }
   0x6   : > { %s3922_s28 = scalar_select %p157_p0, %s3855_s22, %s159_s27  }
   0x7   : > { %p3924_p4 = por %p170_p2, %p169_p1  ;;  %p223_p5 = scmp.lt.s32.totalorder %s3859_s23, 3 }
   0x9   : > { %p224_p6 = pnand %p3593_p3, %p223_p5 }
   0xa   : > { %v278_v0 = vld [vmem:[%s4812_s2] sm:$0xff] (!%p224_p6)  ;;  %s3595_s8 = sshll.u32 (!%p224_p6), %s3912_s24, 4  ;;  %s3861_s9 = smov (!%p224_p6), 127   ;;  %v3862_v1 = vmov (!%p224_p6), 0.0   ;;  %v3863_v3 = vmov (!%p224_p6), 0   ;;  %vm403_vm0 = vcmask (!%p224_p6), 1042432   ;;  %v286_v29 = vlaneseq (!%p224_p6) }
   0xb   : > { %227 = sbr.rel (%p224_p6) target bundleno = 1102 (0x44e), region = 44  ;;  %382 = vrot.lane.b32.xlu0 (!%p224_p6), %v278_v0, %s3861_s9  ;;  %p257_p7 = scmp.lt.s32.totalorder (!%p224_p6), %s3595_s8, 31  ;;  %500 = vmatprep.mubr.f32.mxu0 (!%p224_p6), %v3862_v1  ;;  %v1020_v2 = vld [vmem:[%s4813_s3] sm:$0xff] (!%p224_p6)  ;;  %v3625_v14 = vld [vmem:[%s4813_s3 + $0x28] sm:$0xff] (!%p224_p6)  ;;  %v3648_v15 = vld [vmem:[%s4813_s3 + $0x50] sm:$0xff] (!%p224_p6)  ;;  %vm400_vm1 = vcmask (!%p224_p6), 23552  }
   0xc   : > { %571 = vmatprep.mubr.f32.mxu1 (!%p224_p6), %v3862_v1  ;;  %3828 = vset.pattern.permute.xlu1 (!%p224_p6), %v3863_v3  ;;  %v3624_v4 = vld [vmem:[%s4813_s3 + $0x20] sm:$0xff] (!%p224_p6)  ;;  %v3647_v16 = vld [vmem:[%s4813_s3 + $0x48] sm:$0xff] (!%p224_p6)  ;;  %v3649_v18 = vld [vmem:[%s4813_s3 + $0x58] sm:$0xff] (!%p224_p6)  ;;  %v287_v30 = vshrl.u32 (!%p224_p6), %v286_v29, 7  ;;  %vm1106_vm4 = vcmask (!%p224_p6), 64512   ;;  %s253_s16 = sand.u32 (!%p224_p6), 1, %s3851_s21  }
   0xd   : > { %1023 = vperm.xlu1 (!%p224_p6), %3828, %v1020_v2   ;;  %3827 = vset.pattern.permute.xlu0 (!%p224_p6), %v3863_v3  ;;  %v3646_v5 = vld [vmem:[%s4813_s3 + $0x40] sm:$0xff] (!%p224_p6)  ;;  %v2775_v19 = vld [vmem:[%s4815_s5 + $0x8] sm:$0xff] (!%p224_p6) }
   0xe   : > { %v2774_v17 = vld [vmem:[%s4815_s5] sm:$0xff] (!%p224_p6)  ;;  %v288_v31 = vsub.s32 (!%p224_p6), 0, %v287_v30  ;;  %v296_v32 = vsub.s32 (!%p224_p6), 2, %v287_v30  ;;  %v292_v34 = vsub.s32 (!%p224_p6), 1, %v287_v30  ;;  %v300_v35 = vsub.s32 (!%p224_p6), 3, %v287_v30 }
   0xf   : > { %281 = vperm.xlu0 (!%p224_p6), %3827, %v278_v0   ;;  %v304_v36 = vsub.s32 (!%p224_p6), 4, %v287_v30  ;;  %v312_v37 = vsub.s32 (!%p224_p6), 6, %v287_v30  ;;  %v308_v38 = vsub.s32 (!%p224_p6), 5, %v287_v30  ;;  %v316_v39 = vsub.s32 (!%p224_p6), 7, %v287_v30 }
  0x11   : > { %1098 = vperm.xlu1 (!%p224_p6), %3828, %v3624_v4  }
  0x12   : > { %s4822_s8 = smov (!%p257_p7, %s3595_s8), 31  ;;  %s3703_s21 = sshll.u32 (%p3924_p4), %s3912_s24, 7 }
  0x13   : > { %s3597_s14 = sshll.u32 %s4822_s8, 2  ;;  %1837 = vperm.xlu0 %3827, %v3646_v5   ;;  %s4737_s20 = scalar_lea.vmem (%p3924_p4), %s4816_s6, %s3703_s21 }
  0x14   : > { %s3946_s17 = scalar_lea.vmem %s4811_s1, %s3597_s14 }
  0x15   : > { %v270_v6 = vld [vmem:[%s3946_s17] sm:$0x77]  ;;  %v271_v7 = vld [vmem:[%s3946_s17 + $0x8] sm:$0x77]  ;;  %v272_v8 = vld [vmem:[%s3946_s17 + $0x10] sm:$0x77]  ;;  %1103 = vperm.xlu1 %3828, %v3625_v14  }
  0x16   : > { %v392_v9 = vcombine.high %v270_v6, %v270_v6  ;;  %v393_v10 = vcombine.high %v271_v7, %v271_v7  ;;  %v394_v11 = vcombine.high %v272_v8, %v272_v8  ;;  %v273_v12 = vld [vmem:[%s3946_s17 + $0x18] sm:$0x77]  ;;  %v274_v20 = vld [vmem:[%s3946_s17 + $0x20] sm:$0x77]  ;;  %v275_v21 = vld [vmem:[%s3946_s17 + $0x28] sm:$0x77] }
  0x17   : > { %v395_v13 = vcombine.high %v273_v12, %v273_v12  ;;  %1847 = vperm.xlu0 %3827, %v3648_v15   ;;  %v396_v23 = vcombine.high %v274_v20, %v274_v20  ;;  %v397_v24 = vcombine.high %v275_v21, %v275_v21  ;;  %v276_v25 = vld [vmem:[%s3946_s17 + $0x30] sm:$0x77]  ;;  %v277_v26 = vld [vmem:[%s3946_s17 + $0x38] sm:$0x77]  ;;  %s259_s17 = scalar_lea.vmem %s4810_s0, %s4822_s8 }
  0x18   : > { %3598 = vmatprep.subr.msk.mxu0 %vm403_vm0, %v392_v9  ;;  %3601 = vmatprep.subr.msk.mxu1 %vm403_vm0, %v393_v10  ;;  %v398_v27 = vcombine.high %v276_v25, %v276_v25  ;;  %v399_v28 = vcombine.high %v277_v26, %v277_v26  ;;  %v268_v33 = vld [vmem:[%s259_s17] sm:$0xff]  ;;  %v269_v44 = vld [vmem:[%s259_s17 + $0x8] sm:$0xff]  ;;  %s3594_s17 = sshll.u32 %s253_s16, 8 }
  0x19   : > { %3599 = vmatpush1.msk.msra.mxu0 %vm403_vm0, %v270_v6  ;;  %3602 = vmatpush1.msk.msra.mxu1 %vm403_vm0, %v271_v7  ;;  %v289_v40 = vrot.slane %v268_v33, %v288_v31  ;;  %v297_v41 = vrot.slane %v268_v33, %v296_v32  ;;  %v293_v42 = vrot.slane %v268_v33, %v292_v34  ;;  %s4662_s8 = scalar_lea.vmem [#allocation2], %s3594_s17 }
  0x1a   : > { %3604 = vmatprep.subr.msk.mxu0 %vm403_vm0, %v394_v11  ;;  %3607 = vmatprep.subr.msk.mxu1 %vm403_vm0, %v395_v13  ;;  %v301_v43 = vrot.slane %v268_v33, %v300_v35  ;;  %v305_v45 = vrot.slane %v268_v33, %v304_v36  ;;  %v313_v47 = vrot.slane %v268_v33, %v312_v37 }
  0x1b   : > { %1842 = vperm.xlu1 %3828, %v3647_v16   ;;  %2778 = vperm.xlu0 %3827, %v2774_v17   ;;  %v309_v48 = vrot.slane %v268_v33, %v308_v38  ;;  %v317_v49 = vrot.slane %v268_v33, %v316_v39  ;;  %v321_v52 = vrot.slane %v269_v44, %v288_v31 }
  0x1c   : > { %v329_v55 = vrot.slane %v269_v44, %v296_v32  ;;  %v325_v56 = vrot.slane %v269_v44, %v292_v34  ;;  %v333_v58 = vrot.slane %v269_v44, %v300_v35  ;;  %v337_v59 = vrot.slane %v269_v44, %v304_v36 }
  0x1d   : > { %v345_v60 = vrot.slane %v269_v44, %v312_v37  ;;  %v341_v3 = vrot.slane %v269_v44, %v308_v38  ;;  %v349_v9 = vrot.slane %v269_v44, %v316_v39 }
  0x1f   : > { %1852 = vperm.xlu1 %3828, %v3649_v18  }
  0x23   : > { %2783 = vperm.xlu1 %3828, %v2775_v19  }
  0x7d   : > { %v383_v22 = vpop.permute.xlu0 %382 }
  0x7e   : > { %3600 = vmatmul.mubr.msk.f32.vlgmr.msra.gmra.mrb[0].mxu0 %vm400_vm1, %v383_v22  ;;  %3603 = vmatmul.mubr.msk.f32.vlgmr.msra.gmra.mrb[0].mxu1 %vm400_vm1, %v383_v22 }
  0x7f   : > { %3605 = vmatpush1.msk.msra.mxu0 %vm403_vm0, %v272_v8  ;;  %642 = vmatprep.mubr.f32.mxu0 %v3862_v1 }
  0x80   : > { %3608 = vmatpush1.msk.msra.mxu1 %vm403_vm0, %v273_v12  ;;  %713 = vmatprep.mubr.f32.mxu1 %v3862_v1 }
  0x81   : > { %3610 = vmatprep.subr.msk.mxu0 %vm403_vm0, %v396_v23  ;;  %3613 = vmatprep.subr.msk.mxu1 %vm403_vm0, %v397_v24 }
  0x82   : > { %3606 = vmatmul.mubr.msk.f32.vlgmr.msra.gmra.mrb[2].mxu0 %vm400_vm1, %v383_v22  ;;  %3609 = vmatmul.mubr.msk.f32.vlgmr.msra.gmra.mrb[2].mxu1 %vm400_vm1, %v383_v22 }
  0x83   : > { %3611 = vmatpush1.msk.msra.mxu0 %vm403_vm0, %v274_v20  ;;  %784 = vmatprep.mubr.f32.mxu0 %v3862_v1 }
  0x84   : > { %3614 = vmatpush1.msk.msra.mxu1 %vm403_vm0, %v275_v21  ;;  %855 = vmatprep.mubr.f32.mxu1 %v3862_v1 }
  0x85   : > { %3616 = vmatprep.subr.msk.mxu0 %vm403_vm0, %v398_v27  ;;  %3619 = vmatprep.subr.msk.mxu1 %vm403_vm0, %v399_v28 }
  0x86   : > { %3612 = vmatmul.mubr.msk.f32.vlgmr.msra.gmra.mrb[4].mxu0 %vm400_vm1, %v383_v22  ;;  %3615 = vmatmul.mubr.msk.f32.vlgmr.msra.gmra.mrb[4].mxu1 %vm400_vm1, %v383_v22 }
  0x87   : > { %3617 = vmatpush1.msk.msra.mxu0 %vm403_vm0, %v276_v25  ;;  %926 = vmatprep.mubr.f32.mxu0 %v3862_v1 }
  0x88   : > { %3620 = vmatpush1.msk.msra.mxu1 %vm403_vm0, %v277_v26  ;;  %997 = vmatprep.mubr.f32.mxu1 %v3862_v1 }
  0x8a   : > { %3618 = vmatmul.mubr.msk.f32.vlgmr.msra.gmra.mrb[6].mxu0 %vm400_vm1, %v383_v22  ;;  %3621 = vmatmul.mubr.msk.f32.vlgmr.msra.gmra.mrb[6].mxu1 %vm400_vm1, %v383_v22 }
  0x8b   : > { %1177 = vmatprep.mubr.f32.mxu0 %v3862_v1  ;;  %1254 = vmatprep.mubr.f32.mxu1 %v3862_v1 }
  0x8c   : > { %v4013_v10 = vpop.permute.xlu1 %1023 }
  0x8e   : > { %v282_v46 = vpop.permute.xlu0 %281 }
  0x8f   : > { %v366_v50 = vmul.f32 %v289_v40, %v282_v46  ;;  %v368_v51 = vmul.f32 %v297_v41, %v282_v46  ;;  %v367_v53 = vmul.f32 %v293_v42, %v282_v46  ;;  %v369_v54 = vmul.f32 %v301_v43, %v282_v46 }
  0x90   : > { %v370_v57 = vmul.f32 %v305_v45, %v282_v46  ;;  %v372_v63 = vmul.f32 %v313_v47, %v282_v46  ;;  %v371_v0 = vmul.f32 %v309_v48, %v282_v46  ;;  %v373_v2 = vmul.f32 %v317_v49, %v282_v46  ;;  %v4026_v47 = vld [vmem:[%s4812_s2 + $0x20] sm:$0xff] }
  0x91   : > { %v374_v8 = vmul.f32 %v321_v52, %v282_v46  ;;  %v376_v13 = vmul.f32 %v329_v55, %v282_v46  ;;  %v375_v14 = vmul.f32 %v325_v56, %v282_v46  ;;  %v377_v16 = vmul.f32 %v333_v58, %v282_v46 }
  0x92   : > { %v378_v17 = vmul.f32 %v337_v59, %v282_v46  ;;  %v380_v18 = vmul.f32 %v345_v60, %v282_v46  ;;  %v379_v24 = vmul.f32 %v341_v3, %v282_v46  ;;  %v381_v30 = vmul.f32 %v349_v9, %v282_v46  ;;  %v4039_v3 = vld [vmem:[%s4812_s2 + $0x28] sm:$0xff] }
 0x151   : > { %v502_v61 = vpop.f32.mrb[0].mxu0  ;;  %v573_v62 = vpop.f32.mrb[0].mxu1 }
 0x152   : > { %v1004_v4 = vadd.f32 %v502_v61, %v366_v50  ;;  %v1006_v5 = vadd.f32 %v573_v62, %v368_v51  ;;  %v504_v6 = vpop.f32.mrb[1].mxu0  ;;  %v575_v7 = vpop.f32.mrb[1].mxu1 }
 0x153   : > { %v1005_v11 = vadd.f32 %v504_v6, %v367_v53  ;;  %v1007_v12 = vadd.f32 %v575_v7, %v369_v54 }
 0x154   : > { %v1026_v15 = vadd.f32 %v4013_v10, %v1004_v4  ;;  %v1028_v19 = vadd.f32 %v4013_v10, %v1006_v5 }
 0x155   : > { %v1027_v20 = vadd.f32 %v4013_v10, %v1005_v11  ;;  %v1029_v21 = vadd.f32 %v4013_v10, %v1007_v12  ;;  %v644_v22 = vpop.f32.mrb[2].mxu0  ;;  %v715_v23 = vpop.f32.mrb[2].mxu1 }
 0x156   : > { %v1058_v25 = vmul.f32 0.01, %v1026_v15  ;;  %v1008_v26 = vadd.f32 %v644_v22, %v370_v57  ;;  %v1010_v27 = vadd.f32 %v715_v23, %v372_v63  ;;  %v646_v28 = vpop.f32.mrb[3].mxu0  ;;  %v717_v29 = vpop.f32.mrb[3].mxu1  ;;  %v1060_v36 = vmul.f32 0.01, %v1028_v19 }
 0x157   : > { %v1009_v31 = vadd.f32 %v646_v28, %v371_v0  ;;  %v1011_v32 = vadd.f32 %v717_v29, %v373_v2  ;;  %vm1043_vm2 = vcmp.gt.f32.partialorder %v1027_v20, 0.0  ;;  %v1059_v33 = vmul.f32 0.01, %v1027_v20 }
 0x158   : > { %v1030_v34 = vadd.f32 %v4013_v10, %v1008_v26  ;;  %vm1045_vm3 = vcmp.gt.f32.partialorder %v1029_v21, 0.0  ;;  %v1061_v35 = vmul.f32 0.01, %v1029_v21  ;;  %vm1042_vm5 = vcmp.gt.f32.partialorder %v1026_v15, 0.0 }
 0x159   : > { %v1031_v37 = vadd.f32 %v4013_v10, %v1009_v31  ;;  %v786_v38 = vpop.f32.mrb[4].mxu0  ;;  %v857_v39 = vpop.f32.mrb[4].mxu1  ;;  %v1075_v40 = vsel %vm1043_vm2, %v1027_v20, %v1059_v33  ;;  %v1032_v41 = vadd.f32 %v4013_v10, %v1010_v27  ;;  %v1033_v42 = vadd.f32 %v4013_v10, %v1011_v32 }
 0x15a   : > { %v1012_v43 = vadd.f32 %v786_v38, %v374_v8  ;;  %v1014_v44 = vadd.f32 %v857_v39, %v376_v13  ;;  %v788_v45 = vpop.f32.mrb[5].mxu0  ;;  %v859_v46 = vpop.f32.mrb[5].mxu1  ;;  %1113 = vmatprep.subr.mxu0 %v1075_v40  ;;  %v1077_v50 = vsel %vm1045_vm3, %v1029_v21, %v1061_v35  ;;  %v1074_v51 = vsel %vm1042_vm5, %v1026_v15, %v1058_v25 }
 0x15b   : > { %v1013_v48 = vadd.f32 %v788_v45, %v375_v14  ;;  %v1015_v49 = vadd.f32 %v859_v46, %v377_v16  ;;  %v1062_v52 = vmul.f32 0.01, %v1030_v34  ;;  %1190 = vmatprep.subr.mxu1 %v1077_v50  ;;  %1114 = vmatpush1.msra.mxu0 %v1074_v51  ;;  %vm1044_vm6 = vcmp.gt.f32.partialorder %v1028_v19, 0.0  ;;  %v4092_v31 = vpop.permute.xlu1 %1098 }
 0x15c   : > { %v1034_v53 = vadd.f32 %v4013_v10, %v1012_v43  ;;  %vm1047_vm7 = vcmp.gt.f32.partialorder %v1031_v37, 0.0  ;;  %v1036_v54 = vadd.f32 %v4013_v10, %v1014_v44  ;;  %v1076_v56 = vsel %vm1044_vm6, %v1028_v19, %v1060_v36  ;;  %3626 = vmatmul.mubr.msk.f32.vlgmr.msra.gmra.mrb[8].mxu0 %vm1106_vm4, %v4026_v47 }
 0x15d   : > { %v1035_v55 = vadd.f32 %v4013_v10, %v1013_v48  ;;  %v928_v57 = vpop.f32.mrb[6].mxu0  ;;  %v999_v58 = vpop.f32.mrb[6].mxu1  ;;  %v1063_v59 = vmul.f32 0.01, %v1031_v37  ;;  %v1064_v60 = vmul.f32 0.01, %v1032_v41  ;;  %v1037_v61 = vadd.f32 %v4013_v10, %v1015_v49  ;;  %1191 = vmatpush1.msra.mxu1 %v1076_v56  ;;  %1183 = vmatprep.mubr.f32.mxu0 %v3862_v1 }
 0x15e   : > { %v1016_v62 = vadd.f32 %v928_v57, %v378_v17  ;;  %v1018_v63 = vadd.f32 %v999_v58, %v380_v18  ;;  %v930_v0 = vpop.f32.mrb[7].mxu0  ;;  %v1001_v2 = vpop.f32.mrb[7].mxu1  ;;  %3628 = vmatmul.mubr.msk.f32.vlgmr.msra.gmra.mrb[8].mxu1 %vm1106_vm4, %v4026_v47  ;;  %vm1049_vm8 = vcmp.gt.f32.partialorder %v1033_v42, 0.0  ;;  %v1065_v7 = vmul.f32 0.01, %v1033_v42 }
 0x15f   : > { %v1017_v4 = vadd.f32 %v930_v0, %v379_v24  ;;  %v1019_v5 = vadd.f32 %v1001_v2, %v381_v30  ;;  %v1079_v6 = vsel %vm1047_vm7, %v1031_v37, %v1063_v59  ;;  %1260 = vmatprep.mubr.f32.mxu1 %v3862_v1  ;;  %vm1046_vm9 = vcmp.gt.f32.partialorder %v1030_v34, 0.0  ;;  %v4097_v40 = vpop.permute.xlu1 %1103 }
 0x160   : > { %1267 = vmatprep.subr.mxu0 %v1079_v6  ;;  %v1066_v8 = vmul.f32 0.01, %v1034_v53  ;;  %v1078_v11 = vsel %vm1046_vm9, %v1030_v34, %v1062_v52  ;;  %vm1048_vm10 = vcmp.gt.f32.partialorder %v1032_v41, 0.0  ;;  %3627 = vmatmul.mubr.msk.f32.gmra.mrb[10].mxu0 %vm1106_vm4, %v4039_v3  ;;  %v1068_v12 = vmul.f32 0.01, %v1036_v54 }
 0x161   : > { %v1039_v9 = vadd.f32 %v4013_v10, %v1017_v4  ;;  %v1041_v13 = vadd.f32 %v4013_v10, %v1019_v5  ;;  %v1081_v14 = vsel %vm1049_vm8, %v1033_v42, %v1065_v7  ;;  %1268 = vmatpush1.msra.mxu0 %v1078_v11  ;;  %v1080_v15 = vsel %vm1048_vm10, %v1032_v41, %v1064_v60 }
 0x162   : > { %1331 = vmatprep.mubr.f32.mxu0 %v3862_v1  ;;  %1344 = vmatprep.subr.mxu1 %v1081_v14  ;;  %vm1051_vm11 = vcmp.gt.f32.partialorder %v1035_v55, 0.0  ;;  %v1067_v16 = vmul.f32 0.01, %v1035_v55  ;;  %vm1053_vm12 = vcmp.gt.f32.partialorder %v1037_v61, 0.0  ;;  %v1069_v17 = vmul.f32 0.01, %v1037_v61 }
 0x163   : > { %3629 = vmatmul.mubr.msk.f32.gmra.mrb[10].mxu1 %vm1106_vm4, %v4039_v3  ;;  %vm1050_vm13 = vcmp.gt.f32.partialorder %v1034_v53, 0.0  ;;  %vm1052_vm14 = vcmp.gt.f32.partialorder %v1036_v54, 0.0  ;;  %vm1055_vm15 = vcmp.gt.f32.partialorder %v1039_v9, 0.0  ;;  %v1071_v18 = vmul.f32 0.01, %v1039_v9 }
 0x164   : > { %1345 = vmatpush1.msra.mxu1 %v1080_v15  ;;  %1408 = vmatprep.mubr.f32.mxu1 %v3862_v1  ;;  %v1038_v19 = vadd.f32 %v4013_v10, %v1016_v62  ;;  %v1083_v20 = vsel %vm1051_vm11, %v1035_v55, %v1067_v16  ;;  %v1085_v21 = vsel %vm1053_vm12, %v1037_v61, %v1069_v17  ;;  %vm1057_vm0 = vcmp.gt.f32.partialorder %v1041_v13, 0.0 }
 0x165   : > { %3630 = vmatmul.mubr.msk.f32.vlgmr.msra.gmra.mrb[12].mxu0 %vm1106_vm4, %v4026_v47  ;;  %1421 = vmatprep.subr.mxu0 %v1083_v20  ;;  %v1082_v22 = vsel %vm1050_vm13, %v1034_v53, %v1066_v8  ;;  %v1087_v23 = vsel %vm1055_vm15, %v1039_v9, %v1071_v18  ;;  %v1073_v24 = vmul.f32 0.01, %v1041_v13  ;;  %v1040_v25 = vadd.f32 %v4013_v10, %v1018_v63 }
 0x166   : > { %1498 = vmatprep.subr.mxu1 %v1085_v21  ;;  %1422 = vmatpush1.msra.mxu0 %v1082_v22  ;;  %v1084_v26 = vsel %vm1052_vm14, %v1036_v54, %v1068_v12  ;;  %v1070_v28 = vmul.f32 0.01, %v1038_v19  ;;  %vm1054_vm1 = vcmp.gt.f32.partialorder %v1038_v19, 0.0  ;;  %vm1855_vm10 = vcmask 130048  }
 0x167   : > { %3632 = vmatmul.mubr.msk.f32.vlgmr.msra.gmra.mrb[12].mxu1 %vm1106_vm4, %v4026_v47  ;;  %1575 = vmatprep.subr.mxu0 %v1087_v23  ;;  %v1089_v27 = vsel %vm1057_vm0, %v1041_v13, %v1073_v24  ;;  %v1072_v29 = vmul.f32 0.01, %v1040_v25  ;;  %vm1056_vm2 = vcmp.gt.f32.partialorder %v1040_v25, 0.0 }
 0x168   : > { %1499 = vmatpush1.msra.mxu1 %v1084_v26  ;;  %1337 = vmatprep.mubr.f32.mxu0 %v3862_v1  ;;  %v1086_v10 = vsel %vm1054_vm1, %v1038_v19, %v1070_v28 }
 0x169   : > { %1652 = vmatprep.subr.mxu1 %v1089_v27  ;;  %1414 = vmatprep.mubr.f32.mxu1 %v3862_v1  ;;  %v1088_v30 = vsel %vm1056_vm2, %v1040_v25, %v1072_v29  ;;  %v4129_v29 = vld [vmem:[%s4812_s2 + $0x40] sm:$0xff] }
 0x16a   : > { %3631 = vmatmul.mubr.msk.f32.gmra.mrb[14].mxu0 %vm1106_vm4, %v4039_v3 }
 0x16b   : > { %3633 = vmatmul.mubr.msk.f32.gmra.mrb[14].mxu1 %vm1106_vm4, %v4039_v3  ;;  %1485 = vmatprep.mubr.f32.mxu0 %v3862_v1 }
 0x16c   : > { %1562 = vmatprep.mubr.f32.mxu1 %v3862_v1 }
 0x16e   : > { %3634 = vmatmul.mubr.msk.f32.vlgmr.msra.gmra.mrb[16].mxu0 %vm1106_vm4, %v4026_v47 }
 0x16f   : > { %3636 = vmatmul.mubr.msk.f32.vlgmr.msra.gmra.mrb[16].mxu1 %vm1106_vm4, %v4026_v47  ;;  %1576 = vmatpush1.msra.mxu0 %v1086_v10 }
 0x170   : > { %1653 = vmatpush1.msra.mxu1 %v1088_v30  ;;  %1491 = vmatprep.mubr.f32.mxu0 %v3862_v1 }
 0x171   : > { %1568 = vmatprep.mubr.f32.mxu1 %v3862_v1 }
 0x172   : > { %3635 = vmatmul.mubr.msk.f32.gmra.mrb[18].mxu0 %vm1106_vm4, %v4039_v3 }
 0x173   : > { %3637 = vmatmul.mubr.msk.f32.gmra.mrb[18].mxu1 %vm1106_vm4, %v4039_v3  ;;  %1639 = vmatprep.mubr.f32.mxu0 %v3862_v1 }
 0x174   : > { %1716 = vmatprep.mubr.f32.mxu1 %v3862_v1 }
 0x176   : > { %3638 = vmatmul.mubr.msk.f32.vlgmr.msra.gmra.mrb[20].mxu0 %vm1106_vm4, %v4026_v47 }
 0x177   : > { %3640 = vmatmul.mubr.msk.f32.vlgmr.msra.gmra.mrb[20].mxu1 %vm1106_vm4, %v4026_v47  ;;  %1645 = vmatprep.mubr.f32.mxu0 %v3862_v1 }
 0x178   : > { %1722 = vmatprep.mubr.f32.mxu1 %v3862_v1 }
 0x17a   : > { %3639 = vmatmul.mubr.msk.f32.gmra.mrb[22].mxu0 %vm1106_vm4, %v4039_v3 }
 0x17b   : > { %3641 = vmatmul.mubr.msk.f32.gmra.mrb[22].mxu1 %vm1106_vm4, %v4039_v3  ;;  %1932 = vmatprep.mubr.f32.mxu0 %v3862_v1 }
 0x17c   : > { %2021 = vmatprep.mubr.f32.mxu1 %v3862_v1 }
 0x22f   : > { %v1179_v32 = vpop.f32.mrb[8].mxu0 }
 0x230   : > { %v1180_v33 = vadd.f32 %v1179_v32, %v4092_v31  ;;  %v1181_v34 = vpop.f32.mrb[9].mxu0 }
 0x231   : > { %v1256_v35 = vpop.f32.mrb[8].mxu1  ;;  %v1182_v36 = vadd.f32 %v1181_v34, %v4092_v31 }
 0x232   : > { %vm1729_vm3 = vcmp.gt.f32.partialorder %v1180_v33, 0.0  ;;  %v1761_v37 = vmul.f32 0.01, %v1180_v33  ;;  %v1257_v38 = vadd.f32 %v1256_v35, %v4092_v31  ;;  %v1258_v39 = vpop.f32.mrb[9].mxu1 }
 0x233   : > { %vm1730_vm4 = vcmp.gt.f32.partialorder %v1182_v36, 0.0  ;;  %v1762_v41 = vmul.f32 0.01, %v1182_v36  ;;  %v1259_v42 = vadd.f32 %v1258_v39, %v4092_v31  ;;  %v1185_v43 = vpop.f32.mrb[10].mxu0 }
 0x234   : > { %vm1731_vm5 = vcmp.gt.f32.partialorder %v1257_v38, 0.0  ;;  %v1763_v44 = vmul.f32 0.01, %v1257_v38  ;;  %v1186_v45 = vadd.f32 %v1185_v43, %v4097_v40  ;;  %v1187_v46 = vpop.f32.mrb[11].mxu0  ;;  %v1793_v47 = vsel %vm1729_vm3, %v1180_v33, %v1761_v37 }
 0x235   : > { %vm1732_vm6 = vcmp.gt.f32.partialorder %v1259_v42, 0.0  ;;  %v1764_v48 = vmul.f32 0.01, %v1259_v42  ;;  %v1188_v50 = vadd.f32 %v1187_v46, %v4097_v40  ;;  %v1794_v54 = vsel %vm1730_vm4, %v1182_v36, %v1762_v41 }
 0x236   : > { %v1262_v49 = vpop.f32.mrb[10].mxu1  ;;  %vm1745_vm7 = vcmp.gt.f32.partialorder %v1186_v45, 0.0  ;;  %v1777_v51 = vmul.f32 0.01, %v1186_v45  ;;  %v1795_v55 = vsel %vm1731_vm5, %v1257_v38, %v1763_v44 }
 0x237   : > { %v1263_v52 = vadd.f32 %v1262_v49, %v4097_v40  ;;  %v1264_v53 = vpop.f32.mrb[11].mxu1  ;;  %vm1746_vm8 = vcmp.gt.f32.partialorder %v1188_v50, 0.0  ;;  %v1778_v56 = vmul.f32 0.01, %v1188_v50  ;;  %v1796_v4 = vsel %vm1732_vm6, %v1259_v42, %v1764_v48 }
 0x238   : > { %v1265_v57 = vadd.f32 %v1264_v53, %v4097_v40  ;;  %v1333_v58 = vpop.f32.mrb[12].mxu0  ;;  %v1809_v59 = vsel %vm1745_vm7, %v1186_v45, %v1777_v51 }
 0x239   : > { %vm1747_vm9 = vcmp.gt.f32.partialorder %v1263_v52, 0.0  ;;  %v1779_v60 = vmul.f32 0.01, %v1263_v52  ;;  %v1334_v61 = vadd.f32 %v1333_v58, %v4092_v31  ;;  %v1335_v62 = vpop.f32.mrb[13].mxu0  ;;  %v3706_v63 = vpack.c.bf16 %v1809_v59, %v1793_v47  ;;  %v4147_v47 = vld [vmem:[%s4812_s2 + $0x48] sm:$0xff] }
 0x23a   : > { %v1780_v0 = vmul.f32 0.01, %v1265_v57  ;;  %v1410_v2 = vpop.f32.mrb[12].mxu1  ;;  %v4107_v3 = vadd.f32 %v1335_v62, %v4092_v31  ;;  %vm1748_vm12 = vcmp.gt.f32.partialorder %v1265_v57, 0.0  ;;  %v1810_v15 = vsel %vm1746_vm8, %v1188_v50, %v1778_v56 }
 0x23b   : > { %v1811_v5 = vsel %vm1747_vm9, %v1263_v52, %v1779_v60  ;;  %vm1733_vm11 = vcmp.gt.f32.partialorder %v1334_v61, 0.0  ;;  %v1765_v6 = vmul.f32 0.01, %v1334_v61  ;;  %v1411_v7 = vadd.f32 %v1410_v2, %v4092_v31  ;;  %v1412_v8 = vpop.f32.mrb[13].mxu1 }
 0x23c   : > { %v3710_v9 = vpack.c.bf16 %v1811_v5, %v1795_v55  ;;  %vm1734_vm13 = vcmp.gt.f32.partialorder %v4107_v3, 0.0  ;;  %v4113_v11 = vadd.f32 %v1412_v8, %v4092_v31  ;;  %v1766_v13 = vmul.f32 0.01, %v4107_v3 }
 0x23d   : > { %v4115_v12 = vsel %vm1733_vm11, %v1334_v61, %v1765_v6  ;;  %vm1735_vm14 = vcmp.gt.f32.partialorder %v1411_v7, 0.0  ;;  %v1339_v14 = vpop.f32.mrb[14].mxu0  ;;  %v1767_v16 = vmul.f32 0.01, %v1411_v7  ;;  %v3704_v20 = vpack.c.bf16 %v1810_v15, %v1794_v54  ;;  %v4179_v6 = vld [vmem:[%s4812_s2 + $0x50] sm:$0xff] }
 0x23e   : > { %vm1736_vm15 = vcmp.gt.f32.partialorder %v4113_v11, 0.0  ;;  %v1340_v17 = vadd.f32 %v1339_v14, %v4097_v40  ;;  %v1416_v18 = vpop.f32.mrb[14].mxu1  ;;  %v1341_v19 = vpop.f32.mrb[15].mxu0  ;;  %v1768_v21 = vmul.f32 0.01, %v4113_v11  ;;  %v1812_v25 = vsel %vm1748_vm12, %v1265_v57, %v1780_v0 }
 0x23f   : > { %v1417_v22 = vadd.f32 %v1416_v18, %v4097_v40  ;;  %v1342_v23 = vadd.f32 %v1341_v19, %v4097_v40  ;;  %v1418_v24 = vpop.f32.mrb[15].mxu1  ;;  %3705 = vmatprep.subr.bf16.mxu0 %v3704_v20  ;;  %v3708_v28 = vpack.c.bf16 %v1812_v25, %v1796_v4  ;;  %v4132_v32 = vsel %vm1735_vm14, %v1411_v7, %v1767_v16 }
 0x240   : > { %vm1749_vm0 = vcmp.gt.f32.partialorder %v1340_v17, 0.0  ;;  %v1781_v26 = vmul.f32 0.01, %v1340_v17  ;;  %v1419_v27 = vadd.f32 %v1418_v24, %v4097_v40  ;;  %3707 = vmatpush1.bf16.msra.mxu0 %v3706_v63  ;;  %v1798_v52 = vsel %vm1734_vm13, %v4107_v3, %v1766_v13  ;;  %v4204_v24 = vld [vmem:[%s4812_s2 + $0x58] sm:$0xff] }
 0x241   : > { %vm1751_vm1 = vcmp.gt.f32.partialorder %v1417_v22, 0.0  ;;  %v1783_v10 = vmul.f32 0.01, %v1417_v22  ;;  %vm1750_vm2 = vcmp.gt.f32.partialorder %v1342_v23, 0.0  ;;  %v1782_v30 = vmul.f32 0.01, %v1342_v23  ;;  %3709 = vmatprep.subr.bf16.mxu1 %v3708_v28 }
 0x242   : > { %v1813_v33 = vsel %vm1749_vm0, %v1340_v17, %v1781_v26  ;;  %vm1752_vm3 = vcmp.gt.f32.partialorder %v1419_v27, 0.0  ;;  %v1784_v34 = vmul.f32 0.01, %v1419_v27  ;;  %v1487_v35 = vpop.f32.mrb[16].mxu0  ;;  %v1564_v36 = vpop.f32.mrb[16].mxu1  ;;  %3711 = vmatpush1.bf16.msra.mxu1 %v3710_v9  ;;  %v1800_v62 = vsel %vm1736_vm15, %v4113_v11, %v1768_v21 }
 0x243   : > { %v3714_v37 = vpack.c.bf16 %v1813_v33, %v4115_v12  ;;  %v1815_v38 = vsel %vm1751_vm1, %v1417_v22, %v1783_v10  ;;  %v1488_v39 = vadd.f32 %v1487_v35, %v4092_v31  ;;  %v1565_v41 = vadd.f32 %v1564_v36, %v4092_v31  ;;  %v1489_v42 = vpop.f32.mrb[17].mxu0  ;;  %v1566_v43 = vpop.f32.mrb[17].mxu1  ;;  %3650 = vmatmul.mubr.msk.f32.vlgmr.msra.gmra.mrb[24].mxu0 %vm1855_vm10, %v4129_v29 }
 0x244   : > { %v3718_v44 = vpack.c.bf16 %v1815_v38, %v4132_v32  ;;  %v1490_v45 = vadd.f32 %v1489_v42, %v4092_v31  ;;  %v4140_v46 = vadd.f32 %v1566_v43, %v4092_v31  ;;  %v1814_v48 = vsel %vm1750_vm2, %v1342_v23, %v1782_v30  ;;  %1938 = vmatprep.mubr.f32.mxu0 %v3862_v1 }
 0x245   : > { %vm1737_vm4 = vcmp.gt.f32.partialorder %v1488_v39, 0.0  ;;  %v1769_v49 = vmul.f32 0.01, %v1488_v39  ;;  %vm1739_vm5 = vcmp.gt.f32.partialorder %v1565_v41, 0.0  ;;  %v1771_v50 = vmul.f32 0.01, %v1565_v41  ;;  %3654 = vmatmul.mubr.msk.f32.vlgmr.msra.gmra.mrb[24].mxu1 %vm1855_vm10, %v4129_v29 }
 0x246   : > { %vm1738_vm6 = vcmp.gt.f32.partialorder %v1490_v45, 0.0  ;;  %v1770_v51 = vmul.f32 0.01, %v1490_v45  ;;  %vm1740_vm7 = vcmp.gt.f32.partialorder %v4140_v46, 0.0  ;;  %v1493_v55 = vpop.f32.mrb[18].mxu0  ;;  %v1570_v56 = vpop.f32.mrb[18].mxu1  ;;  %2027 = vmatprep.mubr.f32.mxu1 %v3862_v1  ;;  %v3712_v57 = vpack.c.bf16 %v1814_v48, %v1798_v52 }
 0x247   : > { %v4156_v53 = vsel %vm1737_vm4, %v1488_v39, %v1769_v49  ;;  %v4158_v54 = vsel %vm1739_vm5, %v1565_v41, %v1771_v50  ;;  %v1494_v58 = vadd.f32 %v1493_v55, %v4097_v40  ;;  %v1571_v59 = vadd.f32 %v1570_v56, %v4097_v40  ;;  %v1495_v60 = vpop.f32.mrb[19].mxu0  ;;  %v1572_v61 = vpop.f32.mrb[19].mxu1  ;;  %3651 = vmatmul.mubr.msk.f32.gmra.mrb[26].mxu0 %vm1855_vm10, %v4147_v47 }
 0x248   : > { %v1816_v63 = vsel %vm1752_vm3, %v1419_v27, %v1784_v34  ;;  %v4171_v0 = vmul.f32 0.01, %v4140_v46  ;;  %v1496_v2 = vadd.f32 %v1495_v60, %v4097_v40  ;;  %v1573_v3 = vadd.f32 %v1572_v61, %v4097_v40  ;;  %3713 = vmatprep.subr.bf16.mxu0 %v3712_v57  ;;  %1944 = vmatprep.mubr.f32.mxu0 %v3862_v1 }
 0x249   : > { %v3716_v4 = vpack.c.bf16 %v1816_v63, %v1800_v62  ;;  %v1641_v5 = vpop.f32.mrb[20].mxu0  ;;  %vm1753_vm8 = vcmp.gt.f32.partialorder %v1494_v58, 0.0  ;;  %v1785_v7 = vmul.f32 0.01, %v1494_v58  ;;  %vm1755_vm9 = vcmp.gt.f32.partialorder %v1571_v59, 0.0  ;;  %3655 = vmatmul.mubr.msk.f32.gmra.mrb[26].mxu1 %vm1855_vm10, %v4147_v47  ;;  %3715 = vmatpush1.bf16.msra.mxu0 %v3714_v37 }
 0x24a   : > { %v1787_v8 = vmul.f32 0.01, %v1571_v59  ;;  %vm1754_vm11 = vcmp.gt.f32.partialorder %v1496_v2, 0.0  ;;  %v1786_v9 = vmul.f32 0.01, %v1496_v2  ;;  %vm1756_vm12 = vcmp.gt.f32.partialorder %v1573_v3, 0.0  ;;  %2033 = vmatprep.mubr.f32.mxu1 %v3862_v1 }
 0x24b   : > { %3717 = vmatprep.subr.bf16.mxu1 %v3716_v4  ;;  %v4185_v11 = vsel %vm1738_vm6, %v1490_v45, %v1770_v51  ;;  %v4187_v12 = vsel %vm1753_vm8, %v1494_v58, %v1785_v7  ;;  %v1788_v14 = vmul.f32 0.01, %v1573_v3  ;;  %v1642_v15 = vadd.f32 %v1641_v5, %v4092_v31  ;;  %v1718_v16 = vpop.f32.mrb[20].mxu1  ;;  %v1643_v17 = vpop.f32.mrb[21].mxu0  ;;  %3652 = vmatmul.mubr.msk.f32.gmra.mrb[28].mxu0 %vm1855_vm10, %v4179_v6 }
 0x24c   : > { %v4189_v13 = vsel %vm1755_vm9, %v1571_v59, %v1787_v8  ;;  %3719 = vmatpush1.bf16.msra.mxu1 %v3718_v44  ;;  %v3722_v18 = vpack.c.bf16 %v4187_v12, %v4156_v53  ;;  %v1719_v20 = vadd.f32 %v1718_v16, %v4092_v31  ;;  %v1644_v21 = vadd.f32 %v1643_v17, %v4092_v31  ;;  %v1720_v22 = vpop.f32.mrb[21].mxu1 }
 0x24d   : > { %v3726_v19 = vpack.c.bf16 %v4189_v13, %v4158_v54  ;;  %v1647_v23 = vpop.f32.mrb[22].mxu0  ;;  %1950 = vmatprep.mubr.f32.mxu0 %v3862_v1  ;;  %vm1741_vm13 = vcmp.gt.f32.partialorder %v1642_v15, 0.0  ;;  %v1773_v25 = vmul.f32 0.01, %v1642_v15  ;;  %v1721_v26 = vadd.f32 %v1720_v22, %v4092_v31  ;;  %3656 = vmatmul.mubr.msk.f32.gmra.mrb[28].mxu1 %vm1855_vm10, %v4179_v6 }
 0x24e   : > { %v1648_v27 = vadd.f32 %v1647_v23, %v4097_v40  ;;  %v1724_v28 = vpop.f32.mrb[22].mxu1  ;;  %v1649_v10 = vpop.f32.mrb[23].mxu0  ;;  %vm1743_vm14 = vcmp.gt.f32.partialorder %v1719_v20, 0.0  ;;  %v1775_v30 = vmul.f32 0.01, %v1719_v20  ;;  %vm1742_vm15 = vcmp.gt.f32.partialorder %v1644_v21, 0.0  ;;  %2039 = vmatprep.mubr.f32.mxu1 %v3862_v1 }
 0x24f   : > { %v1774_v32 = vmul.f32 0.01, %v1644_v21  ;;  %v1805_v33 = vsel %vm1741_vm13, %v1642_v15, %v1773_v25  ;;  %vm1744_vm0 = vcmp.gt.f32.partialorder %v1721_v26, 0.0  ;;  %v1776_v34 = vmul.f32 0.01, %v1721_v26  ;;  %v1726_v35 = vpop.f32.mrb[23].mxu1  ;;  %3653 = vmatmul.mubr.msk.f32.gmra.mrb[30].mxu0 %vm1855_vm10, %v4204_v24 }
 0x250   : > { %vm1757_vm1 = vcmp.gt.f32.partialorder %v1648_v27, 0.0  ;;  %v1807_v31 = vsel %vm1743_vm14, %v1719_v20, %v1775_v30  ;;  %v1789_v36 = vmul.f32 0.01, %v1648_v27  ;;  %v1725_v37 = vadd.f32 %v1724_v28, %v4097_v40  ;;  %2110 = vmatprep.mubr.f32.mxu0 %v3862_v1 }
 0x251   : > { %v1650_v38 = vadd.f32 %v1649_v10, %v4097_v40  ;;  %v1727_v39 = vadd.f32 %v1726_v35, %v4097_v40  ;;  %3657 = vmatmul.mubr.msk.f32.gmra.mrb[30].mxu1 %vm1855_vm10, %v4204_v24  ;;  %v1818_v41 = vsel %vm1754_vm11, %v1496_v2, %v1786_v9  ;;  %v1804_v42 = vsel %vm1740_vm7, %v4140_v46, %v4171_v0 }
 0x252   : > { %v1820_v43 = vsel %vm1756_vm12, %v1573_v3, %v1788_v14  ;;  %v1821_v44 = vsel %vm1757_vm1, %v1648_v27, %v1789_v36  ;;  %vm1759_vm2 = vcmp.gt.f32.partialorder %v1725_v37, 0.0  ;;  %v1791_v45 = vmul.f32 0.01, %v1725_v37  ;;  %2199 = vmatprep.mubr.f32.mxu1 %v3862_v1  ;;  %v4306_v3 = vpop.permute.xlu1 %1842 }
 0x253   : > { %vm1758_vm3 = vcmp.gt.f32.partialorder %v1650_v38, 0.0  ;;  %v3730_v48 = vpack.c.bf16 %v1821_v44, %v1805_v33  ;;  %v1790_v40 = vmul.f32 0.01, %v1650_v38  ;;  %vm1760_vm4 = vcmp.gt.f32.partialorder %v1727_v39, 0.0  ;;  %3658 = vmatmul.mubr.msk.f32.vlgmr.msra.gmra.mrb[32].mxu0 %vm1855_vm10, %v4129_v29 }
 0x254   : > { %v1792_v49 = vmul.f32 0.01, %v1727_v39  ;;  %v1823_v50 = vsel %vm1759_vm2, %v1725_v37, %v1791_v45  ;;  %v3720_v51 = vpack.c.bf16 %v1818_v41, %v4185_v11  ;;  %v3724_v52 = vpack.c.bf16 %v1820_v43, %v1804_v42  ;;  %2116 = vmatprep.mubr.f32.mxu0 %v3862_v1 }
 0x255   : > { %v1806_v46 = vsel %vm1742_vm15, %v1644_v21, %v1774_v32  ;;  %v3734_v53 = vpack.c.bf16 %v1823_v50, %v1807_v31  ;;  %3662 = vmatmul.mubr.msk.f32.vlgmr.msra.gmra.mrb[32].mxu1 %vm1855_vm10, %v4129_v29  ;;  %v1822_v54 = vsel %vm1758_vm3, %v1650_v38, %v1790_v40  ;;  %v1808_v55 = vsel %vm1744_vm0, %v1721_v26, %v1776_v34 }
 0x256   : > { %v1824_v56 = vsel %vm1760_vm4, %v1727_v39, %v1792_v49  ;;  %3721 = vmatprep.subr.bf16.mxu0 %v3720_v51  ;;  %3725 = vmatprep.subr.bf16.mxu1 %v3724_v52  ;;  %v3728_v57 = vpack.c.bf16 %v1822_v54, %v1806_v46  ;;  %v4324_v31 = vpop.permute.xlu1 %1852 }
 0x257   : > { %v3732_v58 = vpack.c.bf16 %v1824_v56, %v1808_v55  ;;  %3723 = vmatpush1.bf16.msra.mxu0 %v3722_v18  ;;  %3727 = vmatpush1.bf16.msra.mxu1 %v3726_v19 }
 0x258   : > { %2205 = vmatprep.mubr.f32.mxu1 %v3862_v1  ;;  %3659 = vmatmul.mubr.msk.f32.gmra.mrb[34].mxu0 %vm1855_vm10, %v4147_v47 }
 0x259   : > { %3663 = vmatmul.mubr.msk.f32.gmra.mrb[34].mxu1 %vm1855_vm10, %v4147_v47  ;;  %3729 = vmatprep.subr.bf16.mxu0 %v3728_v57 }
 0x25a   : > { %3733 = vmatprep.subr.bf16.mxu1 %v3732_v58  ;;  %2122 = vmatprep.mubr.f32.mxu0 %v3862_v1 }
 0x25b   : > { %2211 = vmatprep.mubr.f32.mxu1 %v3862_v1 }
 0x25c   : > { %3660 = vmatmul.mubr.msk.f32.gmra.mrb[36].mxu0 %vm1855_vm10, %v4179_v6 }
 0x25d   : > { %3664 = vmatmul.mubr.msk.f32.gmra.mrb[36].mxu1 %vm1855_vm10, %v4179_v6  ;;  %2128 = vmatprep.mubr.f32.mxu0 %v3862_v1 }
 0x25e   : > { %2217 = vmatprep.mubr.f32.mxu1 %v3862_v1 }
 0x260   : > { %3661 = vmatmul.mubr.msk.f32.gmra.mrb[38].mxu0 %vm1855_vm10, %v4204_v24 }
 0x261   : > { %3665 = vmatmul.mubr.msk.f32.gmra.mrb[38].mxu1 %vm1855_vm10, %v4204_v24  ;;  %2288 = vmatprep.mubr.f32.mxu0 %v3862_v1 }
 0x262   : > { %2377 = vmatprep.mubr.f32.mxu1 %v3862_v1 }
 0x264   : > { %3666 = vmatmul.mubr.msk.f32.vlgmr.msra.gmra.mrb[40].mxu0 %vm1855_vm10, %v4129_v29 }
 0x265   : > { %3670 = vmatmul.mubr.msk.f32.vlgmr.msra.gmra.mrb[40].mxu1 %vm1855_vm10, %v4129_v29  ;;  %3731 = vmatpush1.bf16.msra.mxu0 %v3730_v48 }
 0x266   : > { %3735 = vmatpush1.bf16.msra.mxu1 %v3734_v53  ;;  %2294 = vmatprep.mubr.f32.mxu0 %v3862_v1 }
 0x267   : > { %2383 = vmatprep.mubr.f32.mxu1 %v3862_v1 }
 0x268   : > { %3667 = vmatmul.mubr.msk.f32.gmra.mrb[42].mxu0 %vm1855_vm10, %v4147_v47 }
 0x269   : > { %3671 = vmatmul.mubr.msk.f32.gmra.mrb[42].mxu1 %vm1855_vm10, %v4147_v47  ;;  %2300 = vmatprep.mubr.f32.mxu0 %v3862_v1 }
 0x26a   : > { %2389 = vmatprep.mubr.f32.mxu1 %v3862_v1 }
 0x26c   : > { %3668 = vmatmul.mubr.msk.f32.gmra.mrb[44].mxu0 %vm1855_vm10, %v4179_v6 }
 0x26d   : > { %3672 = vmatmul.mubr.msk.f32.gmra.mrb[44].mxu1 %vm1855_vm10, %v4179_v6  ;;  %2306 = vmatprep.mubr.f32.mxu0 %v3862_v1 }
 0x26e   : > { %2395 = vmatprep.mubr.f32.mxu1 %v3862_v1 }
 0x270   : > { %3669 = vmatmul.mubr.msk.f32.gmra.mrb[46].mxu0 %vm1855_vm10, %v4204_v24 }
 0x271   : > { %3673 = vmatmul.mubr.msk.f32.gmra.mrb[46].mxu1 %vm1855_vm10, %v4204_v24  ;;  %2466 = vmatprep.mubr.f32.mxu0 %v3862_v1 }
 0x272   : > { %2555 = vmatprep.mubr.f32.mxu1 %v3862_v1 }
 0x274   : > { %3674 = vmatmul.mubr.msk.f32.vlgmr.msra.gmra.mrb[48].mxu0 %vm1855_vm10, %v4129_v29 }
 0x275   : > { %3678 = vmatmul.mubr.msk.f32.vlgmr.msra.gmra.mrb[48].mxu1 %vm1855_vm10, %v4129_v29  ;;  %2472 = vmatprep.mubr.f32.mxu0 %v3862_v1  ;;  %v4301_v29 = vpop.permute.xlu0 %1837 }
 0x276   : > { %2561 = vmatprep.mubr.f32.mxu1 %v3862_v1 }
 0x278   : > { %3675 = vmatmul.mubr.msk.f32.gmra.mrb[50].mxu0 %vm1855_vm10, %v4147_v47 }
 0x279   : > { %3679 = vmatmul.mubr.msk.f32.gmra.mrb[50].mxu1 %vm1855_vm10, %v4147_v47  ;;  %2478 = vmatprep.mubr.f32.mxu0 %v3862_v1  ;;  %v4314_v17 = vpop.permute.xlu0 %1847 }
 0x27a   : > { %2567 = vmatprep.mubr.f32.mxu1 %v3862_v1 }
 0x27c   : > { %3676 = vmatmul.mubr.msk.f32.gmra.mrb[52].mxu0 %vm1855_vm10, %v4179_v6 }
 0x27d   : > { %3680 = vmatmul.mubr.msk.f32.gmra.mrb[52].mxu1 %vm1855_vm10, %v4179_v6  ;;  %2484 = vmatprep.mubr.f32.mxu0 %v3862_v1 }
 0x27e   : > { %2573 = vmatprep.mubr.f32.mxu1 %v3862_v1 }
 0x280   : > { %3677 = vmatmul.mubr.msk.f32.gmra.mrb[54].mxu0 %vm1855_vm10, %v4204_v24 }
 0x281   : > { %3681 = vmatmul.mubr.msk.f32.gmra.mrb[54].mxu1 %vm1855_vm10, %v4204_v24  ;;  %2857 = vmatprep.mubr.f32.mxu0 %v3862_v1 }
 0x282   : > { %2934 = vmatprep.mubr.f32.mxu1 %v3862_v1 }
 0x316   : > { %v1934_v47 = vpop.f32.mrb[24].mxu0 }
 0x317   : > { %v1935_v59 = vadd.f32 %v1934_v47, %v4301_v29  ;;  %v1936_v60 = vpop.f32.mrb[25].mxu0 }
 0x318   : > { %v2023_v61 = vpop.f32.mrb[24].mxu1  ;;  %v1937_v62 = vadd.f32 %v1936_v60, %v4301_v29 }
 0x319   : > { %vm2580_vm5 = vcmp.gt.f32.partialorder %v1935_v59, 0.0  ;;  %v2644_v63 = vmul.f32 0.01, %v1935_v59  ;;  %v2024_v0 = vadd.f32 %v2023_v61, %v4301_v29  ;;  %v2025_v2 = vpop.f32.mrb[25].mxu1 }
 0x31a   : > { %v2645_v4 = vmul.f32 0.01, %v1937_v62  ;;  %v2026_v5 = vadd.f32 %v2025_v2, %v4301_v29  ;;  %v1940_v6 = vpop.f32.mrb[26].mxu0  ;;  %vm2581_vm6 = vcmp.gt.f32.partialorder %v1937_v62, 0.0 }
 0x31b   : > { %vm2582_vm10 = vcmp.gt.f32.partialorder %v2024_v0, 0.0  ;;  %v2646_v7 = vmul.f32 0.01, %v2024_v0  ;;  %v1941_v8 = vadd.f32 %v1940_v6, %v4306_v3  ;;  %v1942_v9 = vpop.f32.mrb[27].mxu0  ;;  %v4310_v11 = vsel %vm2580_vm5, %v1935_v59, %v2644_v63 }
 0x31c   : > { %v2029_v12 = vpop.f32.mrb[26].mxu1  ;;  %v1943_v13 = vadd.f32 %v1942_v9, %v4306_v3  ;;  %vm2583_vm7 = vcmp.gt.f32.partialorder %v2026_v5, 0.0  ;;  %v2647_v19 = vmul.f32 0.01, %v2026_v5  ;;  %v2709_v22 = vsel %vm2581_vm6, %v1937_v62, %v2645_v4 }
 0x31d   : > { %vm2596_vm8 = vcmp.gt.f32.partialorder %v1941_v8, 0.0  ;;  %v2660_v14 = vmul.f32 0.01, %v1941_v8  ;;  %v2030_v15 = vadd.f32 %v2029_v12, %v4306_v3  ;;  %v2031_v16 = vpop.f32.mrb[27].mxu1  ;;  %v4316_v18 = vsel %vm2582_vm10, %v2024_v0, %v2646_v7 }
 0x31e   : > { %v2032_v20 = vadd.f32 %v2031_v16, %v4306_v3  ;;  %v1946_v21 = vpop.f32.mrb[28].mxu0  ;;  %vm2597_vm11 = vcmp.gt.f32.partialorder %v1943_v13, 0.0  ;;  %v2661_v28 = vmul.f32 0.01, %v1943_v13  ;;  %v2711_v39 = vsel %vm2583_vm7, %v2026_v5, %v2647_v19 }
 0x31f   : > { %v2724_v23 = vsel %vm2596_vm8, %v1941_v8, %v2660_v14  ;;  %vm2598_vm9 = vcmp.gt.f32.partialorder %v2030_v15, 0.0  ;;  %v2662_v24 = vmul.f32 0.01, %v2030_v15  ;;  %v1947_v25 = vadd.f32 %v1946_v21, %v4314_v17  ;;  %v1948_v26 = vpop.f32.mrb[29].mxu0 }
 0x320   : > { %v3738_v27 = vpack.c.bf16 %v2724_v23, %v4310_v11  ;;  %v2035_v10 = vpop.f32.mrb[28].mxu1  ;;  %v1949_v30 = vadd.f32 %v1948_v26, %v4314_v17  ;;  %vm2599_vm13 = vcmp.gt.f32.partialorder %v2032_v20, 0.0  ;;  %v2663_v37 = vmul.f32 0.01, %v2032_v20 }
 0x321   : > { %v2726_v32 = vsel %vm2598_vm9, %v2030_v15, %v2662_v24  ;;  %vm2612_vm12 = vcmp.gt.f32.partialorder %v1947_v25, 0.0  ;;  %v2676_v33 = vmul.f32 0.01, %v1947_v25  ;;  %v2036_v34 = vadd.f32 %v2035_v10, %v4314_v17  ;;  %v2037_v35 = vpop.f32.mrb[29].mxu1 }
 0x322   : > { %v3746_v36 = vpack.c.bf16 %v2726_v32, %v4316_v18  ;;  %v1952_v38 = vpop.f32.mrb[30].mxu0  ;;  %vm2613_vm14 = vcmp.gt.f32.partialorder %v1949_v30, 0.0  ;;  %v2677_v41 = vmul.f32 0.01, %v1949_v30  ;;  %v2038_v42 = vadd.f32 %v2037_v35, %v4314_v17 }
 0x323   : > { %v1953_v43 = vadd.f32 %v1952_v38, %v4324_v31  ;;  %v1954_v44 = vpop.f32.mrb[31].mxu0  ;;  %v4330_v45 = vsel %vm2612_vm12, %v1947_v25, %v2676_v33  ;;  %v2678_v48 = vmul.f32 0.01, %v2036_v34  ;;  %v2725_v50 = vsel %vm2597_vm11, %v1943_v13, %v2661_v28  ;;  %v4357_v33 = vld [vmem:[%s4814_s4] sm:$0xff] }
 0x324   : > { %v2041_v40 = vpop.f32.mrb[30].mxu1  ;;  %v1955_v49 = vadd.f32 %v1954_v44, %v4324_v31  ;;  %vm2614_vm15 = vcmp.gt.f32.partialorder %v2036_v34, 0.0  ;;  %v3736_v55 = vpack.c.bf16 %v2725_v50, %v2709_v22  ;;  %v2727_v47 = vsel %vm2599_vm13, %v2032_v20, %v2663_v37 }
 0x325   : > { %vm2628_vm0 = vcmp.gt.f32.partialorder %v1953_v43, 0.0  ;;  %v2692_v51 = vmul.f32 0.01, %v1953_v43  ;;  %v2042_v52 = vadd.f32 %v2041_v40, %v4324_v31  ;;  %v2043_v46 = vpop.f32.mrb[31].mxu1  ;;  %v2742_v60 = vsel %vm2614_vm15, %v2036_v34, %v2678_v48 }
 0x326   : > { %vm2629_vm1 = vcmp.gt.f32.partialorder %v1955_v49, 0.0  ;;  %v2693_v53 = vmul.f32 0.01, %v1955_v49  ;;  %v2044_v54 = vadd.f32 %v2043_v46, %v4324_v31  ;;  %v2112_v56 = vpop.f32.mrb[32].mxu0  ;;  %v2679_v61 = vmul.f32 0.01, %v2038_v42  ;;  %3737 = vmatprep.subr.bf16.mxu0 %v3736_v55 }
 0x327   : > { %v2756_v57 = vsel %vm2628_vm0, %v1953_v43, %v2692_v51  ;;  %vm2630_vm2 = vcmp.gt.f32.partialorder %v2042_v52, 0.0  ;;  %v2694_v58 = vmul.f32 0.01, %v2042_v52  ;;  %v2114_v59 = vpop.f32.mrb[33].mxu0  ;;  %v3744_v63 = vpack.c.bf16 %v2727_v47, %v2711_v39  ;;  %3739 = vmatpush1.bf16.msra.mxu0 %v3738_v27 }
 0x328   : > { %v3742_v62 = vpack.c.bf16 %v2756_v57, %v4330_v45  ;;  %v2201_v0 = vpop.f32.mrb[32].mxu1  ;;  %v2113_v4 = vadd.f32 %v2112_v56, %v4301_v29  ;;  %v2115_v6 = vadd.f32 %v2114_v59, %v4301_v29  ;;  %v2695_v9 = vmul.f32 0.01, %v2044_v54 }
 0x329   : > { %v2758_v2 = vsel %vm2630_vm2, %v2042_v52, %v2694_v58  ;;  %v2202_v5 = vadd.f32 %v2201_v0, %v4301_v29  ;;  %v2203_v7 = vpop.f32.mrb[33].mxu1  ;;  %3745 = vmatprep.subr.bf16.mxu1 %v3744_v63  ;;  %v2757_v12 = vsel %vm2629_vm1, %v1955_v49, %v2693_v53  ;;  %vm2615_vm3 = vcmp.gt.f32.partialorder %v2038_v42, 0.0  ;;  %v4391_v58 = vld [vmem:[%s4814_s4 + $0x8] sm:$0xff] }
 0x32a   : > { %v3750_v8 = vpack.c.bf16 %v2758_v2, %v2742_v60  ;;  %v4342_v11 = vadd.f32 %v2203_v7, %v4301_v29  ;;  %vm2631_vm4 = vcmp.gt.f32.partialorder %v2044_v54, 0.0  ;;  %3747 = vmatpush1.bf16.msra.mxu1 %v3746_v36  ;;  %v2741_v13 = vsel %vm2613_vm14, %v1949_v30, %v2677_v41 }
 0x32b   : > { %vm2786_vm5 = vcmask 261120   ;;  %vm2584_vm10 = vcmp.gt.f32.partialorder %v2113_v4, 0.0  ;;  %v2648_v14 = vmul.f32 0.01, %v2113_v4  ;;  %vm2586_vm6 = vcmp.gt.f32.partialorder %v2202_v5, 0.0  ;;  %v2118_v18 = vpop.f32.mrb[34].mxu0 }
 0x32c   : > { %v2650_v15 = vmul.f32 0.01, %v2202_v5  ;;  %vm2585_vm7 = vcmp.gt.f32.partialorder %v2115_v6, 0.0  ;;  %v2649_v16 = vmul.f32 0.01, %v2115_v6  ;;  %vm2587_vm8 = vcmp.gt.f32.partialorder %v4342_v11, 0.0 }
 0x32d   : > { %v2207_v19 = vpop.f32.mrb[34].mxu1  ;;  %v3740_v20 = vpack.c.bf16 %v2757_v12, %v2741_v13  ;;  %v2119_v21 = vadd.f32 %v2118_v18, %v4306_v3  ;;  %v2120_v23 = vpop.f32.mrb[35].mxu0  ;;  %v2743_v25 = vsel %vm2615_vm3, %v2038_v42, %v2679_v61  ;;  %v2759_v26 = vsel %vm2631_vm4, %v2044_v54, %v2695_v9 }
 0x32e   : > { %v2208_v22 = vadd.f32 %v2207_v19, %v4306_v3  ;;  %v2209_v24 = vpop.f32.mrb[35].mxu1  ;;  %v2651_v27 = vmul.f32 0.01, %v4342_v11  ;;  %v2121_v28 = vadd.f32 %v2120_v23, %v4306_v3  ;;  %v3748_v30 = vpack.c.bf16 %v2759_v26, %v2743_v25 }
 0x32f   : > { %v2210_v10 = vadd.f32 %v2209_v24, %v4306_v3  ;;  %3741 = vmatprep.subr.bf16.mxu0 %v3740_v20  ;;  %v2124_v32 = vpop.f32.mrb[36].mxu0  ;;  %vm2600_vm9 = vcmp.gt.f32.partialorder %v2119_v21, 0.0  ;;  %v2664_v34 = vmul.f32 0.01, %v2119_v21  ;;  %v4360_v36 = vsel %vm2584_vm10, %v2113_v4, %v2648_v14 }
 0x330   : > { %vm2602_vm11 = vcmp.gt.f32.partialorder %v2208_v22, 0.0  ;;  %v2666_v35 = vmul.f32 0.01, %v2208_v22  ;;  %3743 = vmatpush1.bf16.msra.mxu0 %v3742_v62  ;;  %v4363_v37 = vsel %vm2586_vm6, %v2202_v5, %v2650_v15  ;;  %v2665_v38 = vmul.f32 0.01, %v2121_v28  ;;  %3749 = vmatprep.subr.bf16.mxu1 %v3748_v30  ;;  %v2213_v45 = vpop.f32.mrb[36].mxu1 }
 0x331   : > { %v4366_v39 = vsel %vm2585_vm7, %v2115_v6, %v2649_v16  ;;  %v4368_v41 = vsel %vm2600_vm9, %v2119_v21, %v2664_v34  ;;  %v2667_v43 = vmul.f32 0.01, %v2210_v10  ;;  %3751 = vmatpush1.bf16.msra.mxu1 %v3750_v8  ;;  %v2125_v44 = vadd.f32 %v2124_v32, %v4314_v17  ;;  %v2126_v48 = vpop.f32.mrb[37].mxu0  ;;  %v2215_v52 = vpop.f32.mrb[37].mxu1 }
 0x332   : > { %v4370_v42 = vsel %vm2602_vm11, %v2208_v22, %v2666_v35  ;;  %v3754_v40 = vpack.c.bf16 %v4368_v41, %v4360_v36  ;;  %v2214_v50 = vadd.f32 %v2213_v45, %v4314_v17  ;;  %v4379_v51 = vadd.f32 %v2126_v48, %v4314_v17 }
 0x333   : > { %v3762_v49 = vpack.c.bf16 %v4370_v42, %v4363_v37  ;;  %3682 = vmatmul.mubr.msk.f32.vlgmr.msra.gmra.mrb[56].mxu0 %vm2786_vm5, %v4357_v33  ;;  %v2130_v46 = vpop.f32.mrb[38].mxu0  ;;  %vm2616_vm12 = vcmp.gt.f32.partialorder %v2125_v44, 0.0  ;;  %v2680_v53 = vmul.f32 0.01, %v2125_v44  ;;  %v4384_v54 = vadd.f32 %v2215_v52, %v4314_v17 }
 0x334   : > { %v2131_v55 = vadd.f32 %v2130_v46, %v4324_v31  ;;  %v2219_v56 = vpop.f32.mrb[38].mxu1  ;;  %2863 = vmatprep.mubr.f32.mxu0 %v3862_v1  ;;  %v2132_v57 = vpop.f32.mrb[39].mxu0  ;;  %vm2601_vm13 = vcmp.gt.f32.partialorder %v2121_v28, 0.0  ;;  %vm2603_vm14 = vcmp.gt.f32.partialorder %v2210_v10, 0.0  ;;  %v2682_v47 = vmul.f32 0.01, %v2214_v50  ;;  %3684 = vmatmul.mubr.msk.f32.vlgmr.msra.gmra.mrb[56].mxu1 %vm2786_vm5, %v4357_v33 }
 0x335   : > { %v2715_v59 = vsel %vm2587_vm8, %v4342_v11, %v2651_v27  ;;  %vm2618_vm15 = vcmp.gt.f32.partialorder %v2214_v50, 0.0  ;;  %vm2617_vm0 = vcmp.gt.f32.partialorder %v4379_v51, 0.0  ;;  %v4400_v60 = vmul.f32 0.01, %v4379_v51  ;;  %2940 = vmatprep.mubr.f32.mxu1 %v3862_v1  ;;  %v2221_v61 = vpop.f32.mrb[39].mxu1 }
 0x336   : > { %vm2632_vm1 = vcmp.gt.f32.partialorder %v2131_v55, 0.0  ;;  %v4404_v62 = vsel %vm2616_vm12, %v2125_v44, %v2680_v53  ;;  %v2696_v63 = vmul.f32 0.01, %v2131_v55  ;;  %v2220_v0 = vadd.f32 %v2219_v56, %v4324_v31 }
 0x337   : > { %v2133_v2 = vadd.f32 %v2132_v57, %v4324_v31  ;;  %3683 = vmatmul.mubr.msk.f32.gmra.mrb[58].mxu0 %vm2786_vm5, %v4391_v58  ;;  %v2290_v4 = vpop.f32.mrb[40].mxu0  ;;  %vm2619_vm2 = vcmp.gt.f32.partialorder %v4384_v54, 0.0  ;;  %v2729_v5 = vsel %vm2601_vm13, %v2121_v28, %v2665_v38  ;;  %v2731_v6 = vsel %vm2603_vm14, %v2210_v10, %v2667_v43 }
 0x338   : > { %v2291_v7 = vadd.f32 %v2290_v4, %v4301_v29  ;;  %v2379_v8 = vpop.f32.mrb[40].mxu1  ;;  %v2292_v9 = vpop.f32.mrb[41].mxu0  ;;  %3011 = vmatprep.mubr.f32.mxu0 %v3862_v1  ;;  %v2683_v11 = vmul.f32 0.01, %v4384_v54  ;;  %v4417_v12 = vsel %vm2632_vm1, %v2131_v55, %v2696_v63  ;;  %vm2634_vm3 = vcmp.gt.f32.partialorder %v2220_v0, 0.0  ;;  %3685 = vmatmul.mubr.msk.f32.gmra.mrb[58].mxu1 %vm2786_vm5, %v4391_v58 }
 0x339   : > { %v2698_v13 = vmul.f32 0.01, %v2220_v0  ;;  %v2381_v14 = vpop.f32.mrb[41].mxu1  ;;  %v4422_v15 = vsel %vm2618_vm15, %v2214_v50, %v2682_v47  ;;  %v3758_v16 = vpack.c.bf16 %v4417_v12, %v4404_v62  ;;  %vm2633_vm4 = vcmp.gt.f32.partialorder %v2133_v2, 0.0  ;;  %3088 = vmatprep.mubr.f32.mxu1 %v3862_v1 }
 0x33a   : > { %v2222_v18 = vadd.f32 %v2221_v61, %v4324_v31  ;;  %v2697_v20 = vmul.f32 0.01, %v2133_v2  ;;  %v3752_v21 = vpack.c.bf16 %v2729_v5, %v4366_v39  ;;  %v3760_v22 = vpack.c.bf16 %v2731_v6, %v2715_v59 }
 0x33b   : > { %v4428_v19 = vsel %vm2634_vm3, %v2220_v0, %v2698_v13  ;;  %v2296_v23 = vpop.f32.mrb[42].mxu0  ;;  %v2652_v25 = vmul.f32 0.01, %v2291_v7  ;;  %v2380_v26 = vadd.f32 %v2379_v8, %v4301_v29  ;;  %v4435_v27 = vadd.f32 %v2292_v9, %v4301_v29 }
 0x33c   : > { %v3766_v24 = vpack.c.bf16 %v4428_v19, %v4422_v15  ;;  %v2385_v28 = vpop.f32.mrb[42].mxu1  ;;  %v2298_v10 = vpop.f32.mrb[43].mxu0  ;;  %3753 = vmatprep.subr.bf16.mxu0 %v3752_v21  ;;  %3761 = vmatprep.subr.bf16.mxu1 %v3760_v22  ;;  %vm2588_vm10 = vcmp.gt.f32.partialorder %v2291_v7, 0.0  ;;  %v4438_v30 = vadd.f32 %v2381_v14, %v4301_v29  ;;  %v2297_v32 = vadd.f32 %v2296_v23, %v4306_v3 }
 0x33d   : > { %v2386_v34 = vadd.f32 %v2385_v28, %v4306_v3  ;;  %v2387_v35 = vpop.f32.mrb[43].mxu1  ;;  %vm2635_vm6 = vcmp.gt.f32.partialorder %v2222_v18, 0.0  ;;  %v2699_v38 = vmul.f32 0.01, %v2222_v18  ;;  %3755 = vmatpush1.bf16.msra.mxu0 %v3754_v40  ;;  %3763 = vmatpush1.bf16.msra.mxu1 %v3762_v49  ;;  %vm2590_vm7 = vcmp.gt.f32.partialorder %v2380_v26, 0.0 }
 0x33e   : > { %v2654_v39 = vmul.f32 0.01, %v2380_v26  ;;  %vm2589_vm8 = vcmp.gt.f32.partialorder %v4435_v27, 0.0  ;;  %v4450_v43 = vmul.f32 0.01, %v4435_v27  ;;  %vm2604_vm9 = vcmp.gt.f32.partialorder %v2297_v32, 0.0 }
 0x33f   : > { %v4453_v44 = vmul.f32 0.01, %v4438_v30  ;;  %v4455_v45 = vsel %vm2588_vm10, %v2291_v7, %v2652_v25  ;;  %v2668_v48 = vmul.f32 0.01, %v2297_v32  ;;  %vm2606_vm11 = vcmp.gt.f32.partialorder %v2386_v34, 0.0  ;;  %v2302_v41 = vpop.f32.mrb[44].mxu0 }
 0x340   : > { %v2670_v36 = vmul.f32 0.01, %v2386_v34  ;;  %vm2591_vm12 = vcmp.gt.f32.partialorder %v4438_v30, 0.0  ;;  %v2299_v37 = vadd.f32 %v2298_v10, %v4306_v3  ;;  %v4460_v42 = vadd.f32 %v2387_v35, %v4306_v3  ;;  %v2391_v50 = vpop.f32.mrb[44].mxu1  ;;  %v2304_v52 = vpop.f32.mrb[45].mxu0 }
 0x341   : > { %v2745_v40 = vsel %vm2617_vm0, %v4379_v51, %v4400_v60  ;;  %v2761_v49 = vsel %vm2633_vm4, %v2133_v2, %v2697_v20  ;;  %v4468_v46 = vsel %vm2590_vm7, %v2380_v26, %v2654_v39  ;;  %v4470_v53 = vsel %vm2604_vm9, %v2297_v32, %v2668_v48  ;;  %v2393_v57 = vpop.f32.mrb[45].mxu1 }
 0x342   : > { %v4472_v55 = vsel %vm2606_vm11, %v2386_v34, %v2670_v36  ;;  %v3756_v56 = vpack.c.bf16 %v2761_v49, %v2745_v40  ;;  %v3770_v47 = vpack.c.bf16 %v4470_v53, %v4455_v45  ;;  %vm2605_vm13 = vcmp.gt.f32.partialorder %v2299_v37, 0.0 }
 0x343   : > { %v3778_v59 = vpack.c.bf16 %v4472_v55, %v4468_v46  ;;  %v2747_v51 = vsel %vm2619_vm2, %v4384_v54, %v2683_v11  ;;  %v2308_v60 = vpop.f32.mrb[46].mxu0  ;;  %v2669_v61 = vmul.f32 0.01, %v2299_v37  ;;  %v2671_v62 = vmul.f32 0.01, %v4460_v42 }
 0x344   : > { %3757 = vmatprep.subr.bf16.mxu0 %v3756_v56  ;;  %v2763_v63 = vsel %vm2635_vm6, %v2222_v18, %v2699_v38  ;;  %v2303_v0 = vadd.f32 %v2302_v41, %v4314_v17  ;;  %v2397_v2 = vpop.f32.mrb[46].mxu1  ;;  %v2310_v4 = vpop.f32.mrb[47].mxu0  ;;  %v2392_v6 = vadd.f32 %v2391_v50, %v4314_v17  ;;  %v4486_v7 = vadd.f32 %v2304_v52, %v4314_v17 }
 0x345   : > { %v3764_v5 = vpack.c.bf16 %v2763_v63, %v2747_v51  ;;  %3759 = vmatpush1.bf16.msra.mxu0 %v3758_v16  ;;  %v4489_v54 = vadd.f32 %v2393_v57, %v4314_v17  ;;  %v2399_v8 = vpop.f32.mrb[47].mxu1  ;;  %v2309_v11 = vadd.f32 %v2308_v60, %v4324_v31  ;;  %v2398_v12 = vadd.f32 %v2397_v2, %v4324_v31 }
 0x346   : > { %vm2620_vm14 = vcmp.gt.f32.partialorder %v2303_v0, 0.0  ;;  %v2684_v9 = vmul.f32 0.01, %v2303_v0  ;;  %vm2607_vm15 = vcmp.gt.f32.partialorder %v4460_v42, 0.0  ;;  %vm2622_vm0 = vcmp.gt.f32.partialorder %v2392_v6, 0.0 }
 0x347   : > { %3765 = vmatprep.subr.bf16.mxu1 %v3764_v5  ;;  %v2686_v13 = vmul.f32 0.01, %v2392_v6  ;;  %v4495_v14 = vmul.f32 0.01, %v4486_v7  ;;  %vm2621_vm1 = vcmp.gt.f32.partialorder %v4486_v7, 0.0  ;;  %vm2636_vm2 = vcmp.gt.f32.partialorder %v2309_v11, 0.0 }
 0x348   : > { %3767 = vmatpush1.bf16.msra.mxu1 %v3766_v24  ;;  %v4502_v16 = vmul.f32 0.01, %v4489_v54  ;;  %3686 = vmatmul.mubr.msk.f32.vlgmr.msra.gmra.mrb[60].mxu0 %vm2786_vm5, %v4357_v33  ;;  %v2468_v18 = vpop.f32.mrb[48].mxu0  ;;  %v2557_v20 = vpop.f32.mrb[48].mxu1  ;;  %v4507_v21 = vsel %vm2620_vm14, %v2303_v0, %v2684_v9  ;;  %v2700_v22 = vmul.f32 0.01, %v2309_v11  ;;  %v2311_v19 = vadd.f32 %v2310_v4, %v4324_v31 }
 0x349   : > { %vm2638_vm3 = vcmp.gt.f32.partialorder %v2398_v12, 0.0  ;;  %v2702_v23 = vmul.f32 0.01, %v2398_v12  ;;  %3017 = vmatprep.mubr.f32.mxu0 %v3862_v1  ;;  %v2470_v15 = vpop.f32.mrb[49].mxu0  ;;  %vm2623_vm4 = vcmp.gt.f32.partialorder %v4489_v54, 0.0  ;;  %v4513_v24 = vadd.f32 %v2399_v8, %v4324_v31  ;;  %v2559_v28 = vpop.f32.mrb[49].mxu1 }
 0x34a   : > { %v2717_v25 = vsel %vm2589_vm8, %v4435_v27, %v4450_v43  ;;  %v2733_v26 = vsel %vm2605_vm13, %v2299_v37, %v2669_v61  ;;  %v4521_v10 = vsel %vm2622_vm0, %v2392_v6, %v2686_v13  ;;  %v4526_v32 = vsel %vm2636_vm2, %v2309_v11, %v2700_v22 }
 0x34b   : > { %3688 = vmatmul.mubr.msk.f32.vlgmr.msra.gmra.mrb[60].mxu1 %vm2786_vm5, %v4357_v33  ;;  %v4528_v34 = vsel %vm2638_vm3, %v2398_v12, %v2702_v23  ;;  %v3768_v35 = vpack.c.bf16 %v2733_v26, %v2717_v25  ;;  %v2474_v38 = vpop.f32.mrb[50].mxu0  ;;  %v3774_v39 = vpack.c.bf16 %v4526_v32, %v4507_v21  ;;  %vm2637_vm10 = vcmp.gt.f32.partialorder %v2311_v19, 0.0 }
 0x34c   : > { %v3782_v27 = vpack.c.bf16 %v4528_v34, %v4521_v10  ;;  %3094 = vmatprep.mubr.f32.mxu1 %v3862_v1  ;;  %3687 = vmatmul.mubr.msk.f32.gmra.mrb[62].mxu0 %vm2786_vm5, %v4391_v58  ;;  %v2719_v43 = vsel %vm2591_vm12, %v4438_v30, %v4453_v44  ;;  %v2563_v48 = vpop.f32.mrb[50].mxu1  ;;  %v2476_v36 = vpop.f32.mrb[51].mxu0  ;;  %v2701_v41 = vmul.f32 0.01, %v2311_v19  ;;  %v2703_v37 = vmul.f32 0.01, %v4513_v24 }
 0x34d   : > { %3769 = vmatprep.subr.bf16.mxu0 %v3768_v35  ;;  %v2735_v40 = vsel %vm2607_vm15, %v4460_v42, %v2671_v62  ;;  %v2469_v49 = vadd.f32 %v2468_v18, %v4301_v29  ;;  %v2565_v50 = vpop.f32.mrb[51].mxu1  ;;  %3165 = vmatprep.mubr.f32.mxu0 %v3862_v1  ;;  %v2558_v30 = vadd.f32 %v2557_v20, %v4301_v29  ;;  %vm2639_vm7 = vcmp.gt.f32.partialorder %v4513_v24, 0.0 }
 0x34e   : > { %v3776_v52 = vpack.c.bf16 %v2735_v40, %v2719_v43  ;;  %3771 = vmatpush1.bf16.msra.mxu0 %v3770_v47  ;;  %v4552_v44 = vadd.f32 %v2470_v15, %v4301_v29  ;;  %v4555_v56 = vadd.f32 %v2559_v28, %v4301_v29  ;;  %v2475_v57 = vadd.f32 %v2474_v38, %v4306_v3 }
 0x34f   : > { %3689 = vmatmul.mubr.msk.f32.gmra.mrb[62].mxu1 %vm2786_vm5, %v4391_v58  ;;  %vm2592_vm6 = vcmp.gt.f32.partialorder %v2469_v49, 0.0  ;;  %v2656_v42 = vmul.f32 0.01, %v2469_v49  ;;  %v2564_v51 = vadd.f32 %v2563_v48, %v4306_v3  ;;  %v2480_v60 = vpop.f32.mrb[52].mxu0  ;;  %vm2594_vm8 = vcmp.gt.f32.partialorder %v2558_v30, 0.0 }
 0x350   : > { %3777 = vmatprep.subr.bf16.mxu1 %v3776_v52  ;;  %v2658_v45 = vmul.f32 0.01, %v2558_v30  ;;  %v4563_v53 = vmul.f32 0.01, %v4552_v44  ;;  %3242 = vmatprep.mubr.f32.mxu1 %v3862_v1  ;;  %vm2593_vm9 = vcmp.gt.f32.partialorder %v4552_v44, 0.0  ;;  %vm2608_vm11 = vcmp.gt.f32.partialorder %v2475_v57, 0.0 }
 0x351   : > { %3779 = vmatpush1.bf16.msra.mxu1 %v3778_v59  ;;  %v4571_v29 = vmul.f32 0.01, %v4555_v56  ;;  %v2569_v47 = vpop.f32.mrb[52].mxu1  ;;  %v2482_v61 = vpop.f32.mrb[53].mxu0  ;;  %v4574_v62 = vsel %vm2592_vm6, %v2469_v49, %v2656_v42  ;;  %v2672_v63 = vmul.f32 0.01, %v2475_v57  ;;  %v2477_v4 = vadd.f32 %v2476_v36, %v4306_v3 }
 0x352   : > { %vm2610_vm12 = vcmp.gt.f32.partialorder %v2564_v51, 0.0  ;;  %v2674_v0 = vmul.f32 0.01, %v2564_v51  ;;  %v2571_v2 = vpop.f32.mrb[53].mxu1  ;;  %v4578_v46 = vadd.f32 %v2565_v50, %v4306_v3  ;;  %v2749_v55 = vsel %vm2621_vm1, %v4486_v7, %v4495_v14 }
 0x353   : > { %v2765_v59 = vsel %vm2637_vm10, %v2311_v19, %v2701_v41  ;;  %v2486_v5 = vpop.f32.mrb[54].mxu0  ;;  %v4586_v6 = vsel %vm2594_vm8, %v2558_v30, %v2658_v45  ;;  %vm2595_vm13 = vcmp.gt.f32.partialorder %v4555_v56, 0.0  ;;  %v2736_v8 = vsel %vm2608_vm11, %v2475_v57, %v2672_v63 }
 0x354   : > { %v4589_v9 = vsel %vm2610_vm12, %v2564_v51, %v2674_v0  ;;  %v3772_v11 = vpack.c.bf16 %v2765_v59, %v2749_v55  ;;  %v2575_v12 = vpop.f32.mrb[54].mxu1  ;;  %v2488_v3 = vpop.f32.mrb[55].mxu0  ;;  %v3786_v13 = vpack.c.bf16 %v2736_v8, %v4574_v62  ;;  %vm2609_vm14 = vcmp.gt.f32.partialorder %v2477_v4, 0.0 }
 0x355   : > { %v3794_v18 = vpack.c.bf16 %v4589_v9, %v4586_v6  ;;  %v2751_v7 = vsel %vm2623_vm4, %v4489_v54, %v4502_v16  ;;  %v2577_v14 = vpop.f32.mrb[55].mxu1  ;;  %v2673_v20 = vmul.f32 0.01, %v2477_v4  ;;  %vm2611_vm15 = vcmp.gt.f32.partialorder %v4578_v46, 0.0 }
 0x356   : > { %3773 = vmatprep.subr.bf16.mxu0 %v3772_v11  ;;  %v2767_v22 = vsel %vm2639_vm7, %v4513_v24, %v2703_v37  ;;  %v2481_v23 = vadd.f32 %v2480_v60, %v4314_v17  ;;  %v2570_v19 = vadd.f32 %v2569_v47, %v4314_v17  ;;  %v2483_v54 = vadd.f32 %v2482_v61, %v4314_v17 }
 0x357   : > { %v3780_v15 = vpack.c.bf16 %v2767_v22, %v2751_v7  ;;  %3775 = vmatpush1.bf16.msra.mxu0 %v3774_v39  ;;  %v2572_v16 = vadd.f32 %v2571_v2, %v4314_v17  ;;  %v2487_v26 = vadd.f32 %v2486_v5, %v4324_v31  ;;  %v2576_v28 = vadd.f32 %v2575_v12, %v4324_v31 }
 0x358   : > { %vm2624_vm0 = vcmp.gt.f32.partialorder %v2481_v23, 0.0  ;;  %v2688_v25 = vmul.f32 0.01, %v2481_v23  ;;  %v2675_v24 = vmul.f32 0.01, %v4578_v46  ;;  %vm2626_vm1 = vcmp.gt.f32.partialorder %v2570_v19, 0.0 }
 0x359   : > { %3781 = vmatprep.subr.bf16.mxu1 %v3780_v15  ;;  %v2690_v35 = vmul.f32 0.01, %v2570_v19  ;;  %vm2625_vm2 = vcmp.gt.f32.partialorder %v2483_v54, 0.0  ;;  %v2689_v32 = vmul.f32 0.01, %v2483_v54  ;;  %vm2640_vm3 = vcmp.gt.f32.partialorder %v2487_v26, 0.0 }
 0x35a   : > { %3783 = vmatpush1.bf16.msra.mxu1 %v3782_v27  ;;  %v2752_v21 = vsel %vm2624_vm0, %v2481_v23, %v2688_v25  ;;  %v2691_v38 = vmul.f32 0.01, %v2572_v16  ;;  %3690 = vmatmul.mubr.msk.f32.vlgmr.msra.gmra.mrb[64].mxu0 %vm2786_vm5, %v4357_v33  ;;  %vm2627_vm4 = vcmp.gt.f32.partialorder %v2572_v16, 0.0  ;;  %v2704_v17 = vmul.f32 0.01, %v2487_v26 }
 0x35b   : > { %vm2642_vm10 = vcmp.gt.f32.partialorder %v2576_v28, 0.0  ;;  %v2706_v39 = vmul.f32 0.01, %v2576_v28  ;;  %3171 = vmatprep.mubr.f32.mxu0 %v3862_v1  ;;  %v2489_v43 = vadd.f32 %v2488_v3, %v4324_v31  ;;  %v2578_v48 = vadd.f32 %v2577_v14, %v4324_v31 }
 0x35c   : > { %v2721_v10 = vsel %vm2593_vm9, %v4552_v44, %v4563_v53  ;;  %v2737_v34 = vsel %vm2609_vm14, %v2477_v4, %v2673_v20  ;;  %v2754_v27 = vsel %vm2626_vm1, %v2570_v19, %v2690_v35  ;;  %v2768_v36 = vsel %vm2640_vm3, %v2487_v26, %v2704_v17  ;;  %v4658_v53 = vpop.permute.xlu0 %2778 }
 0x35d   : > { %3692 = vmatmul.mubr.msk.f32.vlgmr.msra.gmra.mrb[64].mxu1 %vm2786_vm5, %v4357_v33  ;;  %v2770_v41 = vsel %vm2642_vm10, %v2576_v28, %v2706_v39  ;;  %v3784_v37 = vpack.c.bf16 %v2737_v34, %v2721_v10  ;;  %v3790_v40 = vpack.c.bf16 %v2768_v36, %v2752_v21  ;;  %vm2641_vm6 = vcmp.gt.f32.partialorder %v2489_v43, 0.0 }
 0x35e   : > { %v3798_v49 = vpack.c.bf16 %v2770_v41, %v2754_v27  ;;  %3248 = vmatprep.mubr.f32.mxu1 %v3862_v1  ;;  %v2705_v31 = vmul.f32 0.01, %v2489_v43  ;;  %3691 = vmatmul.mubr.msk.f32.gmra.mrb[66].mxu0 %vm2786_vm5, %v4391_v58  ;;  %vm2643_vm7 = vcmp.gt.f32.partialorder %v2578_v48, 0.0  ;;  %v2707_v50 = vmul.f32 0.01, %v2578_v48 }
 0x35f   : > { %3785 = vmatprep.subr.bf16.mxu0 %v3784_v37  ;;  %v2723_v52 = vsel %vm2595_vm13, %v4555_v56, %v4571_v29  ;;  %v2739_v30 = vsel %vm2611_vm15, %v4578_v46, %v2675_v24  ;;  %3319 = vmatprep.mubr.f32.mxu0 %v3862_v1  ;;  %v2753_v42 = vsel %vm2625_vm2, %v2483_v54, %v2689_v32 }
 0x360   : > { %v3792_v44 = vpack.c.bf16 %v2739_v30, %v2723_v52  ;;  %3787 = vmatpush1.bf16.msra.mxu0 %v3786_v13  ;;  %v2769_v57 = vsel %vm2641_vm6, %v2489_v43, %v2705_v31  ;;  %v2755_v60 = vsel %vm2627_vm4, %v2572_v16, %v2691_v38  ;;  %v2771_v45 = vsel %vm2643_vm7, %v2578_v48, %v2707_v50 }
 0x361   : > { %3693 = vmatmul.mubr.msk.f32.gmra.mrb[66].mxu1 %vm2786_vm5, %v4391_v58  ;;  %v3788_v51 = vpack.c.bf16 %v2769_v57, %v2753_v42  ;;  %v3796_v56 = vpack.c.bf16 %v2771_v45, %v2755_v60 }
 0x362   : > { %3793 = vmatprep.subr.bf16.mxu1 %v3792_v44  ;;  %3396 = vmatprep.mubr.f32.mxu1 %v3862_v1 }
 0x363   : > { %3795 = vmatpush1.bf16.msra.mxu1 %v3794_v18  ;;  %3789 = vmatprep.subr.bf16.mxu0 %v3788_v51 }
 0x364   : > { %3797 = vmatprep.subr.bf16.mxu1 %v3796_v56  ;;  %3791 = vmatpush1.bf16.msra.mxu0 %v3790_v40 }
 0x367   : > { %3799 = vmatpush1.bf16.msra.mxu1 %v3798_v49  ;;  %3694 = vmatmul.mubr.msk.f32.vlgmr.msra.gmra.mrb[68].mxu0 %vm2786_vm5, %v4357_v33 }
 0x368   : > { %3325 = vmatprep.mubr.f32.mxu0 %v3862_v1 }
 0x36a   : > { %3696 = vmatmul.mubr.msk.f32.vlgmr.msra.gmra.mrb[68].mxu1 %vm2786_vm5, %v4357_v33 }
 0x36b   : > { %3402 = vmatprep.mubr.f32.mxu1 %v3862_v1  ;;  %3695 = vmatmul.mubr.msk.f32.gmra.mrb[70].mxu0 %vm2786_vm5, %v4391_v58 }
 0x36e   : > { %3697 = vmatmul.mubr.msk.f32.gmra.mrb[70].mxu1 %vm2786_vm5, %v4391_v58  ;;  %v4666_v58 = vpop.permute.xlu1 %2783 }
 0x406   : > { %v2859_v29 = vpop.f32.mrb[56].mxu0 }
 0x407   : > { %v2860_v47 = vadd.f32 %v2859_v29, %v4658_v53  ;;  %v2861_v61 = vpop.f32.mrb[57].mxu0  ;;  %v2936_v62 = vpop.f32.mrb[56].mxu1 }
 0x408   : > { %v2862_v63 = vadd.f32 %v2861_v61, %v4658_v53  ;;  %v2937_v1 = vadd.f32 %v2936_v62, %v4658_v53  ;;  %v2938_v33 = vpop.f32.mrb[57].mxu1 }
 0x409   : > { %3409 = vst [vmem:[%s4662_s8] sm:$0xff] %v2860_v47  ;;  %v2939_v0 = vadd.f32 %v2938_v33, %v4658_v53 }
 0x40a   : > { %3410 = vst [vmem:[%s4662_s8 + $0x8] sm:$0xff] %v2862_v63  ;;  %v2865_v2 = vpop.f32.mrb[58].mxu0  ;;  %3411 = vst [vmem:[%s4662_s8 + $0x10] sm:$0xff] %v2937_v1 }
 0x40b   : > { %v2866_v4 = vadd.f32 %v2865_v2, %v4666_v58  ;;  %v2867_v46 = vpop.f32.mrb[59].mxu0  ;;  %3412 = vst [vmem:[%s4662_s8 + $0x18] sm:$0xff] %v2939_v0  ;;  %v2942_v55 = vpop.f32.mrb[58].mxu1 }
 0x40c   : > { %v2868_v59 = vadd.f32 %v2867_v46, %v4666_v58  ;;  %v2943_v5 = vadd.f32 %v2942_v55, %v4666_v58  ;;  %v2944_v6 = vpop.f32.mrb[59].mxu1 }
 0x40d   : > { %3425 = vst [vmem:[%s4662_s8 + $0x80] sm:$0xff] %v2866_v4  ;;  %v2945_v8 = vadd.f32 %v2944_v6, %v4666_v58 }
 0x40e   : > { %3426 = vst [vmem:[%s4662_s8 + $0x88] sm:$0xff] %v2868_v59  ;;  %3427 = vst [vmem:[%s4662_s8 + $0x90] sm:$0xff] %v2943_v5 }
 0x40f   : > { %3428 = vst [vmem:[%s4662_s8 + $0x98] sm:$0xff] %v2945_v8 }
 0x411   : > { %v3465_v61 = vld [vmem:[%s4662_s8 + $0x8] sm:$0xff] (%p3924_p4)  ;;  %v3467_v62 = vld [vmem:[%s4662_s8 + $0x10] sm:$0xff] (%p3924_p4) }
 0x412   : > { %v3469_v63 = vld [vmem:[%s4662_s8 + $0x18] sm:$0xff] (%p3924_p4)  ;;  %3466 = vst [vmem:[%s4737_s20 + $0x8] sm:$0xff] (%p3924_p4), %v3465_v61  ;;  %3468 = vst [vmem:[%s4737_s20 + $0x10] sm:$0xff] (%p3924_p4), %v3467_v62 }
 0x413   : > { %3470 = vst [vmem:[%s4737_s20 + $0x18] sm:$0xff] (%p3924_p4), %v3469_v63 }
 0x41b   : > { %v3013_v9 = vpop.f32.mrb[60].mxu0 }
 0x41c   : > { %v3014_v11 = vadd.f32 %v3013_v9, %v4658_v53  ;;  %v3015_v12 = vpop.f32.mrb[61].mxu0  ;;  %v3495_v9 = vld [vmem:[%s4662_s8 + $0x80] sm:$0xff] (%p3924_p4) }
 0x41d   : > { %v3016_v3 = vadd.f32 %v3015_v12, %v4658_v53  ;;  %3496 = vst [vmem:[%s4737_s20 + $0x100] sm:$0xff] (%p3924_p4), %v3495_v9  ;;  %v3499_v12 = vld [vmem:[%s4662_s8 + $0x90] sm:$0xff] (%p3924_p4) }
 0x41e   : > { %3413 = vst [vmem:[%s4662_s8 + $0x20] sm:$0xff] %v3014_v11  ;;  %v3090_v13 = vpop.f32.mrb[60].mxu1  ;;  %v3497_v11 = vld [vmem:[%s4662_s8 + $0x88] sm:$0xff] (%p3924_p4)  ;;  %3500 = vst [vmem:[%s4737_s20 + $0x110] sm:$0xff] (%p3924_p4), %v3499_v12 }
 0x41f   : > { %v3091_v18 = vadd.f32 %v3090_v13, %v4658_v53  ;;  %3414 = vst [vmem:[%s4662_s8 + $0x28] sm:$0xff] %v3016_v3  ;;  %v3092_v7 = vpop.f32.mrb[61].mxu1  ;;  %v3019_v14 = vpop.f32.mrb[62].mxu0  ;;  %3498 = vst [vmem:[%s4737_s20 + $0x108] sm:$0xff] (%p3924_p4), %v3497_v11  ;;  %v3501_v3 = vld [vmem:[%s4662_s8 + $0x98] sm:$0xff] (%p3924_p4) }
 0x420   : > { %v3093_v20 = vadd.f32 %v3092_v7, %v4658_v53  ;;  %v3020_v22 = vadd.f32 %v3019_v14, %v4666_v58  ;;  %v3021_v23 = vpop.f32.mrb[63].mxu0  ;;  %3502 = vst [vmem:[%s4737_s20 + $0x118] sm:$0xff] (%p3924_p4), %v3501_v3 }
 0x421   : > { %3415 = vst [vmem:[%s4662_s8 + $0x30] sm:$0xff] %v3091_v18  ;;  %v3022_v15 = vadd.f32 %v3021_v23, %v4666_v58 }
 0x422   : > { %3416 = vst [vmem:[%s4662_s8 + $0x38] sm:$0xff] %v3093_v20  ;;  %3429 = vst [vmem:[%s4662_s8 + $0xa0] sm:$0xff] %v3020_v22  ;;  %v3096_v19 = vpop.f32.mrb[62].mxu1 }
 0x423   : > { %v3097_v54 = vadd.f32 %v3096_v19, %v4666_v58  ;;  %3430 = vst [vmem:[%s4662_s8 + $0xa8] sm:$0xff] %v3022_v15  ;;  %v3098_v16 = vpop.f32.mrb[63].mxu1 }
 0x424   : > { %v3099_v25 = vadd.f32 %v3098_v16, %v4666_v58 }
 0x425   : > { %3431 = vst [vmem:[%s4662_s8 + $0xb0] sm:$0xff] %v3097_v54  ;;  %v3471_v1 = vld [vmem:[%s4662_s8 + $0x20] sm:$0xff] (%p3924_p4) }
 0x426   : > { %3432 = vst [vmem:[%s4662_s8 + $0xb8] sm:$0xff] %v3099_v25  ;;  %v3473_v33 = vld [vmem:[%s4662_s8 + $0x28] sm:$0xff] (%p3924_p4)  ;;  %3472 = vst [vmem:[%s4737_s20 + $0x20] sm:$0xff] (%p3924_p4), %v3471_v1 }
 0x427   : > { %3474 = vst [vmem:[%s4737_s20 + $0x28] sm:$0xff] (%p3924_p4), %v3473_v33 }
 0x429   : > { %v3477_v0 = vld [vmem:[%s4662_s8 + $0x38] sm:$0xff] (%p3924_p4)  ;;  %v3503_v13 = vld [vmem:[%s4662_s8 + $0xa0] sm:$0xff] (%p3924_p4) }
 0x42a   : > { %3478 = vst [vmem:[%s4737_s20 + $0x38] sm:$0xff] (%p3924_p4), %v3477_v0  ;;  %3504 = vst [vmem:[%s4737_s20 + $0x120] sm:$0xff] (%p3924_p4), %v3503_v13  ;;  %v3505_v18 = vld [vmem:[%s4662_s8 + $0xa8] sm:$0xff] (%p3924_p4) }
 0x42b   : > { %3506 = vst [vmem:[%s4737_s20 + $0x128] sm:$0xff] (%p3924_p4), %v3505_v18 }
 0x42c   : > { %v3507_v7 = vld [vmem:[%s4662_s8 + $0xb0] sm:$0xff] (%p3924_p4) }
 0x42d   : > { %v3167_v26 = vpop.f32.mrb[64].mxu0  ;;  %v3509_v14 = vld [vmem:[%s4662_s8 + $0xb8] sm:$0xff] (%p3924_p4)  ;;  %3508 = vst [vmem:[%s4737_s20 + $0x130] sm:$0xff] (%p3924_p4), %v3507_v7 }
 0x42e   : > { %v3168_v28 = vadd.f32 %v3167_v26, %v4658_v53  ;;  %v3169_v24 = vpop.f32.mrb[65].mxu0  ;;  %3510 = vst [vmem:[%s4737_s20 + $0x138] sm:$0xff] (%p3924_p4), %v3509_v14 }
 0x42f   : > { %v3170_v35 = vadd.f32 %v3169_v24, %v4658_v53 }
 0x430   : > { %3417 = vst [vmem:[%s4662_s8 + $0x40] sm:$0xff] %v3168_v28  ;;  %v3244_v21 = vpop.f32.mrb[64].mxu1 }
 0x431   : > { %v3245_v32 = vadd.f32 %v3244_v21, %v4658_v53  ;;  %3418 = vst [vmem:[%s4662_s8 + $0x48] sm:$0xff] %v3170_v35  ;;  %v3246_v38 = vpop.f32.mrb[65].mxu1  ;;  %v3173_v17 = vpop.f32.mrb[66].mxu0 }
 0x432   : > { %v3247_v39 = vadd.f32 %v3246_v38, %v4658_v53  ;;  %v3174_v43 = vadd.f32 %v3173_v17, %v4666_v58  ;;  %v3175_v48 = vpop.f32.mrb[67].mxu0 }
 0x433   : > { %3419 = vst [vmem:[%s4662_s8 + $0x50] sm:$0xff] %v3245_v32  ;;  %v3176_v10 = vadd.f32 %v3175_v48, %v4666_v58 }
 0x434   : > { %3420 = vst [vmem:[%s4662_s8 + $0x58] sm:$0xff] %v3247_v39  ;;  %3433 = vst [vmem:[%s4662_s8 + $0xc0] sm:$0xff] %v3174_v43  ;;  %v3250_v34 = vpop.f32.mrb[66].mxu1 }
 0x435   : > { %v3251_v27 = vadd.f32 %v3250_v34, %v4666_v58  ;;  %3434 = vst [vmem:[%s4662_s8 + $0xc8] sm:$0xff] %v3176_v10  ;;  %v3252_v36 = vpop.f32.mrb[67].mxu1 }
 0x436   : > { %v3253_v41 = vadd.f32 %v3252_v36, %v4666_v58 }
 0x437   : > { %3435 = vst [vmem:[%s4662_s8 + $0xd0] sm:$0xff] %v3251_v27  ;;  %v3479_v2 = vld [vmem:[%s4662_s8 + $0x40] sm:$0xff] (%p3924_p4) }
 0x438   : > { %3436 = vst [vmem:[%s4662_s8 + $0xd8] sm:$0xff] %v3253_v41  ;;  %3480 = vst [vmem:[%s4737_s20 + $0x40] sm:$0xff] (%p3924_p4), %v3479_v2  ;;  %v3481_v4 = vld [vmem:[%s4662_s8 + $0x48] sm:$0xff] (%p3924_p4) }
 0x439   : > { %3482 = vst [vmem:[%s4737_s20 + $0x48] sm:$0xff] (%p3924_p4), %v3481_v4 }
 0x43a   : > { %v3321_v37 = vpop.f32.mrb[68].mxu0  ;;  %v3483_v46 = vld [vmem:[%s4662_s8 + $0x50] sm:$0xff] (%p3924_p4) }
 0x43b   : > { %v3322_v40 = vadd.f32 %v3321_v37, %v4658_v53  ;;  %v3323_v49 = vpop.f32.mrb[69].mxu0  ;;  %v3485_v55 = vld [vmem:[%s4662_s8 + $0x58] sm:$0xff] (%p3924_p4)  ;;  %3484 = vst [vmem:[%s4737_s20 + $0x50] sm:$0xff] (%p3924_p4), %v3483_v46  ;;  %v3511_v20 = vld [vmem:[%s4662_s8 + $0xc0] sm:$0xff] (%p3924_p4) }
 0x43c   : > { %v3324_v31 = vadd.f32 %v3323_v49, %v4658_v53  ;;  %3486 = vst [vmem:[%s4737_s20 + $0x58] sm:$0xff] (%p3924_p4), %v3485_v55  ;;  %v3513_v22 = vld [vmem:[%s4662_s8 + $0xc8] sm:$0xff] (%p3924_p4)  ;;  %3512 = vst [vmem:[%s4737_s20 + $0x140] sm:$0xff] (%p3924_p4), %v3511_v20 }
 0x43d   : > { %3421 = vst [vmem:[%s4662_s8 + $0x60] sm:$0xff] %v3322_v40  ;;  %v3398_v50 = vpop.f32.mrb[68].mxu1  ;;  %3514 = vst [vmem:[%s4737_s20 + $0x148] sm:$0xff] (%p3924_p4), %v3513_v22 }
 0x43e   : > { %v3399_v52 = vadd.f32 %v3398_v50, %v4658_v53  ;;  %3422 = vst [vmem:[%s4662_s8 + $0x68] sm:$0xff] %v3324_v31  ;;  %v3400_v30 = vpop.f32.mrb[69].mxu1  ;;  %v3327_v44 = vpop.f32.mrb[70].mxu0  ;;  %v3515_v23 = vld [vmem:[%s4662_s8 + $0xd0] sm:$0xff] (%p3924_p4) }
 0x43f   : > { %v3401_v42 = vadd.f32 %v3400_v30, %v4658_v53  ;;  %v3328_v57 = vadd.f32 %v3327_v44, %v4666_v58  ;;  %v3329_v51 = vpop.f32.mrb[71].mxu0  ;;  %3447 = sbr.rel (!%p3924_p4) target bundleno = 1102 (0x44e), region = 48  ;;  %v3463_v53 = vld [vmem:[%s4662_s8] sm:$0xff] (%p3924_p4)  ;;  %3516 = vst [vmem:[%s4737_s20 + $0x150] sm:$0xff] (%p3924_p4), %v3515_v23  ;;  %v3517_v15 = vld [vmem:[%s4662_s8 + $0xd8] sm:$0xff] (%p3924_p4) }
 0x440   : > { %3423 = vst [vmem:[%s4662_s8 + $0x70] sm:$0xff] %v3399_v52  ;;  %v3330_v60 = vadd.f32 %v3329_v51, %v4666_v58  ;;  %3464 = vst [vmem:[%s4737_s20] sm:$0xff] (%p3924_p4), %v3463_v53 }
 0x441   : > { %3424 = vst [vmem:[%s4662_s8 + $0x78] sm:$0xff] %v3401_v42  ;;  %3437 = vst [vmem:[%s4662_s8 + $0xe0] sm:$0xff] %v3328_v57  ;;  %v3404_v45 = vpop.f32.mrb[70].mxu1 }
 0x442   : > { %v3405_v56 = vadd.f32 %v3404_v45, %v4666_v58  ;;  %3438 = vst [vmem:[%s4662_s8 + $0xe8] sm:$0xff] %v3330_v60  ;;  %v3406_v29 = vpop.f32.mrb[71].mxu1  ;;  %3518 = vst [vmem:[%s4737_s20 + $0x158] sm:$0xff] (%p3924_p4), %v3517_v15 }
 0x443   : > { %v3407_v47 = vadd.f32 %v3406_v29, %v4666_v58  ;;  %v3475_v58 = vld [vmem:[%s4662_s8 + $0x30] sm:$0xff] (%p3924_p4) }
 0x444   : > { %3439 = vst [vmem:[%s4662_s8 + $0xf0] sm:$0xff] %v3405_v56  ;;  %3476 = vst [vmem:[%s4737_s20 + $0x30] sm:$0xff] (%p3924_p4), %v3475_v58  ;;  %v3487_v59 = vld [vmem:[%s4662_s8 + $0x60] sm:$0xff] (%p3924_p4) }
 0x445   : > { %3440 = vst [vmem:[%s4662_s8 + $0xf8] sm:$0xff] %v3407_v47  ;;  %v3489_v5 = vld [vmem:[%s4662_s8 + $0x68] sm:$0xff] (%p3924_p4)  ;;  %3488 = vst [vmem:[%s4737_s20 + $0x60] sm:$0xff] (%p3924_p4), %v3487_v59 }
 0x446   : > { %3490 = vst [vmem:[%s4737_s20 + $0x68] sm:$0xff] %v3489_v5 }
 0x447   : > { %v3491_v6 = vld [vmem:[%s4662_s8 + $0x70] sm:$0xff] }
 0x448   : > { %3492 = vst [vmem:[%s4737_s20 + $0x70] sm:$0xff] %v3491_v6  ;;  %v3493_v8 = vld [vmem:[%s4662_s8 + $0x78] sm:$0xff]  ;;  %v3519_v19 = vld [vmem:[%s4662_s8 + $0xe0] sm:$0xff] }
 0x449   : > { %3494 = vst [vmem:[%s4737_s20 + $0x78] sm:$0xff] %v3493_v8  ;;  %v3521_v54 = vld [vmem:[%s4662_s8 + $0xe8] sm:$0xff]  ;;  %3520 = vst [vmem:[%s4737_s20 + $0x160] sm:$0xff] %v3519_v19 }
 0x44a   : > { %3522 = vst [vmem:[%s4737_s20 + $0x168] sm:$0xff] %v3521_v54 }
 0x44b   : > { %v3523_v16 = vld [vmem:[%s4662_s8 + $0xf0] sm:$0xff] }
 0x44c   : > { %v3525_v25 = vld [vmem:[%s4662_s8 + $0xf8] sm:$0xff]  ;;  %3524 = vst [vmem:[%s4737_s20 + $0x170] sm:$0xff] %v3523_v16 }
 0x44d   : > { %3526 = vst [vmem:[%s4737_s20 + $0x178] sm:$0xff] %v3525_v25 }
 0x44e PF: > { %p13_p8 = scmp.ge.s32.totalorder %s3914_s25, 4   ;;  %s4818_s21 = smov %s3855_s22 }
 0x44f   : > { %s4819_s22 = smov %s3922_s28  ;;  %s4820_s23 = smov %s3914_s25 }
 0x450   :  { %15 = sbr.rel (!%p13_p8) target bundleno = 2 (0x2), region = 104 }

</bundles_post_ra>
